<compile_context>
chip_gen: v7x
topology: tpu7x:2x2x1
jax: 0.10.0
libtpu: 0.0.40
codegen_flags: <defaults>
</compile_context>

<pallas_src>
import functools
import math

import jax
import jax.numpy as jnp
from jax.experimental import pallas as pl
from jax.experimental.pallas import tpu as pltpu

LN_EPS = 1e-5
NEG_INF = -1e9


# ---------------------------------------------------------------------------
# Shared math (used by both the Pallas kernel body and the plain-JAX reference
# so that the reference mirrors the kernel's mixed-precision policy exactly).
# ---------------------------------------------------------------------------
def _layernorm(x, gamma, beta):
    mu = jnp.mean(x, axis=-1, keepdims=True)
    var = jnp.mean((x - mu) ** 2, axis=-1, keepdims=True)
    return (x - mu) * jax.lax.rsqrt(var + LN_EPS) * gamma + beta


def _mha_math(x_q, x_kv, get_w, get_b, mask, n_head, recip):
    """Multi-head attention with batched-head contractions.

    x_q: [Sq, D] f32, x_kv: [Sk, D] f32, mask: [Sq, Sk] (1 keep, 0 mask).
    get_w(i) -> bf16 [D, D] weight (0:Wq 1:Wk 2:Wv 3:Wo), read at use site.
    get_b(i) -> f32 [1, D] bias.  recip(x) -> elementwise 1/x.
    """
    Sq, D = x_q.shape
    Sk = x_kv.shape[0]
    dh = D // n_head
    scale = 1.0 / math.sqrt(dh)

    xq = x_q.astype(jnp.bfloat16)
    xkv = x_kv.astype(jnp.bfloat16)
    q = jnp.dot(xq, get_w(0), preferred_element_type=jnp.float32) + get_b(0)
    k = jnp.dot(xkv, get_w(1), preferred_element_type=jnp.float32) + get_b(1)
    v = jnp.dot(xkv, get_w(2), preferred_element_type=jnp.float32) + get_b(2)

    # Fold 1/sqrt(dh) into Q (removes an [Sq, Sk] multiply per head).
    q = q * scale

    # [S, D] -> [H, S, dh]; reshapes/transposes done in f32, cast for the MXU.
    qh = jnp.swapaxes(q.reshape(Sq, n_head, dh), 0, 1).astype(jnp.bfloat16)
    kh = jnp.swapaxes(k.reshape(Sk, n_head, dh), 0, 1).astype(jnp.bfloat16)
    vh = jnp.swapaxes(v.reshape(Sk, n_head, dh), 0, 1).astype(jnp.bfloat16)

    # Batched over heads: one MXU stream per contraction, no per-head slices.
    s = jnp.einsum("hqd,hkd->hqk", qh, kh,
                   preferred_element_type=jnp.float32)         # [H, Sq, Sk]
    s = jnp.where(mask[None, :, :] > 0.0, s, NEG_INF)
    s = s - jnp.max(s, axis=-1, keepdims=True)
    p = jnp.exp(s)
    p = p * recip(jnp.sum(p, axis=-1, keepdims=True))

    ctx = jnp.einsum("hqk,hkd->hqd", p.astype(jnp.bfloat16), vh,
                     preferred_element_type=jnp.float32)       # [H, Sq, dh]
    ctx = jnp.swapaxes(ctx, 0, 1).reshape(Sq, D)               # [Sq, D]
    return jnp.dot(ctx.astype(jnp.bfloat16), get_w(3),
                   preferred_element_type=jnp.float32) + get_b(3)


# ---------------------------------------------------------------------------
# Pallas kernel: one full DecoderLayer forward per batch element.
# ---------------------------------------------------------------------------
def _decoder_layer_kernel(dec_ref, enc_ref, tmask_ref, smask_ref,
                          w_self_ref, b_self_ref, w_cross_ref, b_cross_ref,
                          gamma_ref, beta_ref, w1_ref, b1_ref, w2_ref, b2_ref,
                          out_ref, *, n_head):
    bf16 = jnp.bfloat16
    recip = lambda d: pl.reciprocal(d, approx=True)

    x0 = dec_ref[0]          # [S, D]
    enc = enc_ref[0]         # [S_enc, D]

    # 1) masked self-attention + dropout(identity) + residual + norm1
    attn = _mha_math(
        x0, x0,
        lambda i: w_self_ref[i].astype(bf16),      # read weight slice at use
        lambda i: b_self_ref[i:i + 1],
        tmask_ref[0], n_head, recip)
    x = _layernorm(attn + x0, gamma_ref[0:1], beta_ref[0:1])

    # 2) cross-attention (enc as K/V) + residual + norm2
    cattn = _mha_math(
        x, enc,
        lambda i: w_cross_ref[i].astype(bf16),
        lambda i: b_cross_ref[i:i + 1],
        smask_ref[0], n_head, recip)
    x = _layernorm(cattn + x, gamma_ref[1:2], beta_ref[1:2])

    # 3) position-wise FFN (Linear -> ReLU -> Linear) + residual + norm3
    h = jnp.dot(x.astype(bf16), w1_ref[...].astype(bf16),
                preferred_element_type=jnp.float32) + b1_ref[...]
    h = jnp.maximum(h, 0.0)
    ffn = jnp.dot(h.astype(bf16), w2_ref[...].astype(bf16),
                  preferred_element_type=jnp.float32) + b2_ref[...]
    out_ref[0] = _layernorm(ffn + x, gamma_ref[2:3], beta_ref[2:3])


def decoder_layer(dec, enc, t_mask, s_mask, params, n_head):
    B, S, D = dec.shape
    S_enc = enc.shape[1]
    F = params["w1"].shape[1]

    kernel = functools.partial(_decoder_layer_kernel, n_head=n_head)
    in_specs = [
        pl.BlockSpec((1, S, D), lambda b: (b, 0, 0)),         # dec
        pl.BlockSpec((1, S_enc, D), lambda b: (b, 0, 0)),     # enc
        pl.BlockSpec((1, S, S), lambda b: (b, 0, 0)),         # t_mask
        pl.BlockSpec((1, S, S_enc), lambda b: (b, 0, 0)),     # s_mask
        pl.BlockSpec((4, D, D), lambda b: (0, 0, 0)),         # self-attn W
        pl.BlockSpec((4, D), lambda b: (0, 0)),               # self-attn b
        pl.BlockSpec((4, D, D), lambda b: (0, 0, 0)),         # cross-attn W
        pl.BlockSpec((4, D), lambda b: (0, 0)),               # cross-attn b
        pl.BlockSpec((3, D), lambda b: (0, 0)),               # gammas
        pl.BlockSpec((3, D), lambda b: (0, 0)),               # betas
        pl.BlockSpec((D, F), lambda b: (0, 0)),               # ffn W1
        pl.BlockSpec((1, F), lambda b: (0, 0)),               # ffn b1
        pl.BlockSpec((F, D), lambda b: (0, 0)),               # ffn W2
        pl.BlockSpec((1, D), lambda b: (0, 0)),               # ffn b2
    ]
    out_specs = pl.BlockSpec((1, S, D), lambda b: (b, 0, 0))

    return pl.pallas_call(
        kernel,
        out_shape=jax.ShapeDtypeStruct((B, S, D), jnp.float32),
        grid=(B,),
        in_specs=in_specs,
        out_specs=out_specs,
        compiler_params=pltpu.CompilerParams(
            # batch elements are independent -> let megacore split the grid
            dimension_semantics=("parallel",)),
    )(dec, enc, t_mask, s_mask,
      params["w_self"], params["b_self"], params["w_cross"], params["b_cross"],
      params["gamma"], params["beta"],
      params["w1"], params["b1"], params["w2"], params["b2"])


# ---------------------------------------------------------------------------
# Plain-JAX reference (same mixed-precision policy, exact softmax divide)
# ---------------------------------------------------------------------------
def _ref_one(dec, enc, tmask, smask, params, n_head):
    bf16 = jnp.bfloat16
    recip = lambda d: 1.0 / d

    attn = _mha_math(dec, dec,
                     lambda i: params["w_self"][i].astype(bf16),
                     lambda i: params["b_self"][i:i + 1],
                     tmask, n_head, recip)
    x = _layernorm(attn + dec, params["gamma"][0:1], params["beta"][0:1])

    cattn = _mha_math(x, enc,
                      lambda i: params["w_cross"][i].astype(bf16),
                      lambda i: params["b_cross"][i:i + 1],
                      smask, n_head, recip)
    x = _layernorm(cattn + x, params["gamma"][1:2], params["beta"][1:2])

    h = jnp.maximum(
        jnp.dot(x.astype(bf16), params["w1"].astype(bf16),
                preferred_element_type=jnp.float32) + params["b1"], 0.0)
    ffn = jnp.dot(h.astype(bf16), params["w2"].astype(bf16),
                  preferred_element_type=jnp.float32) + params["b2"]
    return _layernorm(ffn + x, params["gamma"][2:3], params["beta"][2:3])


def ref_decoder_layer(dec, enc, t_mask, s_mask, params, n_head):
    fn = functools.partial(_ref_one, params=params, n_head=n_head)
    return jax.vmap(fn)(dec, enc, t_mask, s_mask)


# ---------------------------------------------------------------------------
# Deterministic parameter init
# ---------------------------------------------------------------------------
def init_params(key, d_model, ffn_hidden):
    ks = jax.random.split(key, 10)
    s = 0.08
    return {
        "w_self": jax.random.normal(ks[0], (4, d_model, d_model), jnp.float32) * s,
        "b_self": jax.random.normal(ks[1], (4, d_model), jnp.float32) * s,
        "w_cross": jax.random.normal(ks[2], (4, d_model, d_model), jnp.float32) * s,
        "b_cross": jax.random.normal(ks[3], (4, d_model), jnp.float32) * s,
        "gamma": 1.0 + 0.1 * jax.random.normal(ks[4], (3, d_model), jnp.float32),
        "beta": 0.05 * jax.random.normal(ks[5], (3, d_model), jnp.float32),
        "w1": jax.random.normal(ks[6], (d_model, ffn_hidden), jnp.float32) * s,
        "b1": jax.random.normal(ks[7], (1, ffn_hidden), jnp.float32) * s,
        "w2": jax.random.normal(ks[8], (ffn_hidden, d_model), jnp.float32) * s,
        "b2": jax.random.normal(ks[9], (1, d_model), jnp.float32) * s,
    }


if __name__ == "__main__":
    B, S, S_enc, D, H, FFN = 2, 8, 8, 32, 4, 64

    key = jax.random.PRNGKey(0)
    k_dec, k_enc, k_par = jax.random.split(key, 3)
    dec = jax.random.normal(k_dec, (B, S, D), jnp.float32)
    enc = jax.random.normal(k_enc, (B, S_enc, D), jnp.float32)
    params = init_params(k_par, D, FFN)

    # causal mask for self-attention, all-ones mask for cross-attention
    t_mask = jnp.broadcast_to(jnp.tril(jnp.ones((S, S), jnp.float32)), (B, S, S))
    s_mask = jnp.ones((B, S, S_enc), jnp.float32)

    out = decoder_layer(dec, enc, t_mask, s_mask, params, n_head=H)
    out = jax.block_until_ready(out)

    ref = jax.block_until_ready(
        ref_decoder_layer(dec, enc, t_mask, s_mask, params, n_head=H))

    assert out.shape == (B, S, D)
    # Tolerance covers the approximate-reciprocal softmax normalization.
    assert jnp.allclose(out, ref, atol=5e-3, rtol=5e-3), (
        f"max abs err {jnp.max(jnp.abs(out - ref))}")
    print("KERNEL_OK")
</pallas_src>

<mosaic_0001>
module attributes {stable_mosaic.version = 11 : i64} {
  func.func @_decoder_layer_kernel(%arg0: i32, %arg1: memref<1x8x32xf32, #tpu.memory_space<vmem>>, %arg2: memref<1x8x32xf32, #tpu.memory_space<vmem>>, %arg3: memref<1x8x8xf32, #tpu.memory_space<vmem>>, %arg4: memref<1x8x8xf32, #tpu.memory_space<vmem>>, %arg5: memref<4x32x32xf32, #tpu.memory_space<vmem>>, %arg6: memref<4x32xf32, #tpu.memory_space<vmem>>, %arg7: memref<4x32x32xf32, #tpu.memory_space<vmem>>, %arg8: memref<4x32xf32, #tpu.memory_space<vmem>>, %arg9: memref<3x32xf32, #tpu.memory_space<vmem>>, %arg10: memref<3x32xf32, #tpu.memory_space<vmem>>, %arg11: memref<32x64xf32, #tpu.memory_space<vmem>>, %arg12: memref<1x64xf32, #tpu.memory_space<vmem>>, %arg13: memref<64x32xf32, #tpu.memory_space<vmem>>, %arg14: memref<1x32xf32, #tpu.memory_space<vmem>>, %arg15: memref<1x8x32xf32, #tpu.memory_space<vmem>>) attributes {dimension_semantics = [#tpu.dimension_semantics<parallel>], iteration_bounds = array<i64: 2>, scalar_prefetch = 0 : i64, scratch_operands = 0 : i64, tpu.core_type = #tpu.core_type<tc>, window_params = [{transform_indices = @transform_0, window_bounds = array<i64: 1, 8, 32>}, {transform_indices = @transform_1, window_bounds = array<i64: 1, 8, 32>}, {transform_indices = @transform_2, window_bounds = array<i64: 1, 8, 8>}, {transform_indices = @transform_3, window_bounds = array<i64: 1, 8, 8>}, {pipeline_mode = #tpu.pipeline_mode<synchronous>, transform_indices = @transform_4, window_bounds = array<i64: 4, 32, 32>}, {pipeline_mode = #tpu.pipeline_mode<synchronous>, transform_indices = @transform_5, window_bounds = array<i64: 4, 32>}, {pipeline_mode = #tpu.pipeline_mode<synchronous>, transform_indices = @transform_6, window_bounds = array<i64: 4, 32, 32>}, {pipeline_mode = #tpu.pipeline_mode<synchronous>, transform_indices = @transform_7, window_bounds = array<i64: 4, 32>}, {pipeline_mode = #tpu.pipeline_mode<synchronous>, transform_indices = @transform_8, window_bounds = array<i64: 3, 32>}, {pipeline_mode = #tpu.pipeline_mode<synchronous>, transform_indices = @transform_9, window_bounds = array<i64: 3, 32>}, {pipeline_mode = #tpu.pipeline_mode<synchronous>, transform_indices = @transform_10, window_bounds = array<i64: 32, 64>}, {pipeline_mode = #tpu.pipeline_mode<synchronous>, transform_indices = @transform_11, window_bounds = array<i64: 1, 64>}, {pipeline_mode = #tpu.pipeline_mode<synchronous>, transform_indices = @transform_12, window_bounds = array<i64: 64, 32>}, {pipeline_mode = #tpu.pipeline_mode<synchronous>, transform_indices = @transform_13, window_bounds = array<i64: 1, 32>}, {transform_indices = @transform_14, window_bounds = array<i64: 1, 8, 32>}]} {
    %c0 = arith.constant 0 : index
    %c0_0 = arith.constant 0 : index
    %c0_1 = arith.constant 0 : index
    %0 = vector.load %arg1[%c0, %c0_0, %c0_1] : memref<1x8x32xf32, #tpu.memory_space<vmem>>, vector<1x8x32xf32>
    %1 = vector.shape_cast %0 : vector<1x8x32xf32> to vector<8x32xf32>
    %c0_2 = arith.constant 0 : index
    %c0_3 = arith.constant 0 : index
    %c0_4 = arith.constant 0 : index
    %2 = vector.load %arg2[%c0_2, %c0_3, %c0_4] : memref<1x8x32xf32, #tpu.memory_space<vmem>>, vector<1x8x32xf32>
    %3 = vector.shape_cast %2 : vector<1x8x32xf32> to vector<8x32xf32>
    %c0_5 = arith.constant 0 : index
    %c0_6 = arith.constant 0 : index
    %c0_7 = arith.constant 0 : index
    %4 = vector.load %arg3[%c0_5, %c0_6, %c0_7] : memref<1x8x8xf32, #tpu.memory_space<vmem>>, vector<1x8x8xf32>
    %5 = vector.shape_cast %4 : vector<1x8x8xf32> to vector<8x8xf32>
    %6 = arith.truncf %1 : vector<8x32xf32> to vector<8x32xbf16>
    %7 = arith.truncf %1 : vector<8x32xf32> to vector<8x32xbf16>
    %c0_8 = arith.constant 0 : index
    %c0_9 = arith.constant 0 : index
    %c0_10 = arith.constant 0 : index
    %8 = vector.load %arg5[%c0_8, %c0_9, %c0_10] : memref<4x32x32xf32, #tpu.memory_space<vmem>>, vector<1x32x32xf32>
    %9 = vector.shape_cast %8 : vector<1x32x32xf32> to vector<32x32xf32>
    %10 = arith.truncf %9 : vector<32x32xf32> to vector<32x32xbf16>
    %cst = arith.constant dense<0.000000e+00> : vector<8x32xf32>
    %11 = tpu.matmul %6, %10, %cst {dimension_numbers = #tpu.dot_dimension_numbers<[1], [0], [0], [1], [0, 0, 1, 1], [], []>} : vector<8x32xbf16>, vector<32x32xbf16>, vector<8x32xf32> -> vector<8x32xf32>
    %c0_11 = arith.constant 0 : index
    %c0_12 = arith.constant 0 : index
    %12 = vector.load %arg6[%c0_11, %c0_12] : memref<4x32xf32, #tpu.memory_space<vmem>>, vector<1x32xf32>
    %13 = vector.broadcast %12 : vector<1x32xf32> to vector<8x32xf32>
    %14 = arith.addf %11, %13 : vector<8x32xf32>
    %c1 = arith.constant 1 : index
    %c0_13 = arith.constant 0 : index
    %c0_14 = arith.constant 0 : index
    %15 = vector.load %arg5[%c1, %c0_13, %c0_14] : memref<4x32x32xf32, #tpu.memory_space<vmem>>, vector<1x32x32xf32>
    %16 = vector.shape_cast %15 : vector<1x32x32xf32> to vector<32x32xf32>
    %17 = arith.truncf %16 : vector<32x32xf32> to vector<32x32xbf16>
    %cst_15 = arith.constant dense<0.000000e+00> : vector<8x32xf32>
    %18 = tpu.matmul %7, %17, %cst_15 {dimension_numbers = #tpu.dot_dimension_numbers<[1], [0], [0], [1], [0, 0, 1, 1], [], []>} : vector<8x32xbf16>, vector<32x32xbf16>, vector<8x32xf32> -> vector<8x32xf32>
    %c1_16 = arith.constant 1 : index
    %c0_17 = arith.constant 0 : index
    %19 = vector.load %arg6[%c1_16, %c0_17] : memref<4x32xf32, #tpu.memory_space<vmem>>, vector<1x32xf32>
    %20 = vector.broadcast %19 : vector<1x32xf32> to vector<8x32xf32>
    %21 = arith.addf %18, %20 : vector<8x32xf32>
    %c2 = arith.constant 2 : index
    %c0_18 = arith.constant 0 : index
    %c0_19 = arith.constant 0 : index
    %22 = vector.load %arg5[%c2, %c0_18, %c0_19] : memref<4x32x32xf32, #tpu.memory_space<vmem>>, vector<1x32x32xf32>
    %23 = vector.shape_cast %22 : vector<1x32x32xf32> to vector<32x32xf32>
    %24 = arith.truncf %23 : vector<32x32xf32> to vector<32x32xbf16>
    %cst_20 = arith.constant dense<0.000000e+00> : vector<8x32xf32>
    %25 = tpu.matmul %7, %24, %cst_20 {dimension_numbers = #tpu.dot_dimension_numbers<[1], [0], [0], [1], [0, 0, 1, 1], [], []>} : vector<8x32xbf16>, vector<32x32xbf16>, vector<8x32xf32> -> vector<8x32xf32>
    %c2_21 = arith.constant 2 : index
    %c0_22 = arith.constant 0 : index
    %26 = vector.load %arg6[%c2_21, %c0_22] : memref<4x32xf32, #tpu.memory_space<vmem>>, vector<1x32xf32>
    %27 = vector.broadcast %26 : vector<1x32xf32> to vector<8x32xf32>
    %28 = arith.addf %25, %27 : vector<8x32xf32>
    %cst_23 = arith.constant 0.353553385 : f32
    %29 = vector.broadcast %cst_23 : f32 to vector<8x32xf32>
    %30 = arith.mulf %14, %29 : vector<8x32xf32>
    %31 = vector.shape_cast %30 : vector<8x32xf32> to vector<8x4x8xf32>
    %32 = tpu.transpose %31, [1, 0, 2] : vector<8x4x8xf32> -> vector<4x8x8xf32>
    %33 = arith.truncf %32 : vector<4x8x8xf32> to vector<4x8x8xbf16>
    %34 = vector.shape_cast %21 : vector<8x32xf32> to vector<8x4x8xf32>
    %35 = tpu.transpose %34, [1, 0, 2] : vector<8x4x8xf32> -> vector<4x8x8xf32>
    %36 = arith.truncf %35 : vector<4x8x8xf32> to vector<4x8x8xbf16>
    %37 = vector.shape_cast %28 : vector<8x32xf32> to vector<8x4x8xf32>
    %38 = tpu.transpose %37, [1, 0, 2] : vector<8x4x8xf32> -> vector<4x8x8xf32>
    %39 = arith.truncf %38 : vector<4x8x8xf32> to vector<4x8x8xbf16>
    "tpu.trace_start"() <{level = 10 : i32, message = "hqd,hkd->hqk"}> : () -> ()
    %cst_24 = arith.constant dense<0.000000e+00> : vector<4x8x8xf32>
    %40 = tpu.matmul %33, %36, %cst_24 {dimension_numbers = #tpu.dot_dimension_numbers<[2], [2], [1], [1], [0, 0, 0, 1, 1, 1], [0], [0]>} : vector<4x8x8xbf16>, vector<4x8x8xbf16>, vector<4x8x8xf32> -> vector<4x8x8xf32>
    "tpu.trace_stop"() : () -> ()
    %41 = vector.shape_cast %5 : vector<8x8xf32> to vector<1x8x8xf32>
    %cst_25 = arith.constant 0.000000e+00 : f32
    %42 = vector.broadcast %cst_25 : f32 to vector<1x8x8xf32>
    %43 = arith.cmpf ogt, %41, %42 : vector<1x8x8xf32>
    %cst_26 = arith.constant -1.000000e+09 : f32
    %44 = vector.shape_cast %43 : vector<1x8x8xi1> to vector<1x8x8xi1>
    %45 = vector.broadcast %44 : vector<1x8x8xi1> to vector<4x8x8xi1>
    %46 = vector.broadcast %cst_26 : f32 to vector<4x8x8xf32>
    %47 = arith.select %45, %40, %46 : vector<4x8x8xi1>, vector<4x8x8xf32>
    %cst_27 = arith.constant dense<0xFF800000> : vector<4x8xf32>
    %48 = vector.multi_reduction <maximumf>, %47, %cst_27 [2] : vector<4x8x8xf32> to vector<4x8xf32>
    %49 = vector.shape_cast %48 : vector<4x8xf32> to vector<4x8x1xf32>
    %50 = vector.broadcast %49 : vector<4x8x1xf32> to vector<4x8x8xf32>
    %51 = arith.subf %47, %50 : vector<4x8x8xf32>
    %52 = math.exp %51 : vector<4x8x8xf32>
    %cst_28 = arith.constant dense<0.000000e+00> : vector<4x8xf32>
    %53 = vector.multi_reduction <add>, %52, %cst_28 [2] : vector<4x8x8xf32> to vector<4x8xf32>
    %54 = vector.shape_cast %53 : vector<4x8xf32> to vector<4x8x1xf32>
    %55 = tpu.reciprocal %54 {approx = true} : vector<4x8x1xf32> -> vector<4x8x1xf32>
    %56 = vector.broadcast %55 : vector<4x8x1xf32> to vector<4x8x8xf32>
    %57 = arith.mulf %52, %56 : vector<4x8x8xf32>
    %58 = arith.truncf %57 : vector<4x8x8xf32> to vector<4x8x8xbf16>
    "tpu.trace_start"() <{level = 10 : i32, message = "hqk,hkd->hqd"}> : () -> ()
    %cst_29 = arith.constant dense<0.000000e+00> : vector<4x8x8xf32>
    %59 = tpu.matmul %58, %39, %cst_29 {dimension_numbers = #tpu.dot_dimension_numbers<[2], [1], [1], [2], [0, 0, 0, 1, 1, 2], [0], [0]>} : vector<4x8x8xbf16>, vector<4x8x8xbf16>, vector<4x8x8xf32> -> vector<4x8x8xf32>
    "tpu.trace_stop"() : () -> ()
    %60 = tpu.transpose %59, [1, 0, 2] : vector<4x8x8xf32> -> vector<8x4x8xf32>
    %61 = vector.shape_cast %60 : vector<8x4x8xf32> to vector<8x32xf32>
    %62 = arith.truncf %61 : vector<8x32xf32> to vector<8x32xbf16>
    %c3 = arith.constant 3 : index
    %c0_30 = arith.constant 0 : index
    %c0_31 = arith.constant 0 : index
    %63 = vector.load %arg5[%c3, %c0_30, %c0_31] : memref<4x32x32xf32, #tpu.memory_space<vmem>>, vector<1x32x32xf32>
    %64 = vector.shape_cast %63 : vector<1x32x32xf32> to vector<32x32xf32>
    %65 = arith.truncf %64 : vector<32x32xf32> to vector<32x32xbf16>
    %cst_32 = arith.constant dense<0.000000e+00> : vector<8x32xf32>
    %66 = tpu.matmul %62, %65, %cst_32 {dimension_numbers = #tpu.dot_dimension_numbers<[1], [0], [0], [1], [0, 0, 1, 1], [], []>} : vector<8x32xbf16>, vector<32x32xbf16>, vector<8x32xf32> -> vector<8x32xf32>
    %c3_33 = arith.constant 3 : index
    %c0_34 = arith.constant 0 : index
    %67 = vector.load %arg6[%c3_33, %c0_34] : memref<4x32xf32, #tpu.memory_space<vmem>>, vector<1x32xf32>
    %68 = vector.broadcast %67 : vector<1x32xf32> to vector<8x32xf32>
    %69 = arith.addf %66, %68 : vector<8x32xf32>
    %70 = arith.addf %69, %1 : vector<8x32xf32>
    %c0_35 = arith.constant 0 : index
    %c0_36 = arith.constant 0 : index
    %71 = vector.load %arg9[%c0_35, %c0_36] : memref<3x32xf32, #tpu.memory_space<vmem>>, vector<1x32xf32>
    %c0_37 = arith.constant 0 : index
    %c0_38 = arith.constant 0 : index
    %72 = vector.load %arg10[%c0_37, %c0_38] : memref<3x32xf32, #tpu.memory_space<vmem>>, vector<1x32xf32>
    %cst_39 = arith.constant dense<0.000000e+00> : vector<8xf32>
    %73 = vector.multi_reduction <add>, %70, %cst_39 [1] : vector<8x32xf32> to vector<8xf32>
    %74 = vector.shape_cast %73 : vector<8xf32> to vector<8x1xf32>
    %cst_40 = arith.constant 3.200000e+01 : f32
    %75 = vector.broadcast %cst_40 : f32 to vector<8x1xf32>
    %76 = arith.divf %74, %75 : vector<8x1xf32>
    %77 = vector.broadcast %76 : vector<8x1xf32> to vector<8x32xf32>
    %78 = arith.subf %70, %77 : vector<8x32xf32>
    %79 = arith.mulf %78, %78 : vector<8x32xf32>
    %cst_41 = arith.constant dense<0.000000e+00> : vector<8xf32>
    %80 = vector.multi_reduction <add>, %79, %cst_41 [1] : vector<8x32xf32> to vector<8xf32>
    %81 = vector.shape_cast %80 : vector<8xf32> to vector<8x1xf32>
    %cst_42 = arith.constant 3.200000e+01 : f32
    %82 = vector.broadcast %cst_42 : f32 to vector<8x1xf32>
    %83 = arith.divf %81, %82 : vector<8x1xf32>
    %84 = vector.broadcast %76 : vector<8x1xf32> to vector<8x32xf32>
    %85 = arith.subf %70, %84 : vector<8x32xf32>
    %cst_43 = arith.constant 9.99999974E-6 : f32
    %86 = vector.broadcast %cst_43 : f32 to vector<8x1xf32>
    %87 = arith.addf %83, %86 : vector<8x1xf32>
    %88 = math.rsqrt %87 : vector<8x1xf32>
    %89 = vector.broadcast %88 : vector<8x1xf32> to vector<8x32xf32>
    %90 = arith.mulf %85, %89 : vector<8x32xf32>
    %91 = vector.broadcast %71 : vector<1x32xf32> to vector<8x32xf32>
    %92 = arith.mulf %90, %91 : vector<8x32xf32>
    %93 = vector.broadcast %72 : vector<1x32xf32> to vector<8x32xf32>
    %94 = arith.addf %92, %93 : vector<8x32xf32>
    %c0_44 = arith.constant 0 : index
    %c0_45 = arith.constant 0 : index
    %c0_46 = arith.constant 0 : index
    %95 = vector.load %arg4[%c0_44, %c0_45, %c0_46] : memref<1x8x8xf32, #tpu.memory_space<vmem>>, vector<1x8x8xf32>
    %96 = vector.shape_cast %95 : vector<1x8x8xf32> to vector<8x8xf32>
    %97 = arith.truncf %94 : vector<8x32xf32> to vector<8x32xbf16>
    %98 = arith.truncf %3 : vector<8x32xf32> to vector<8x32xbf16>
    %c0_47 = arith.constant 0 : index
    %c0_48 = arith.constant 0 : index
    %c0_49 = arith.constant 0 : index
    %99 = vector.load %arg7[%c0_47, %c0_48, %c0_49] : memref<4x32x32xf32, #tpu.memory_space<vmem>>, vector<1x32x32xf32>
    %100 = vector.shape_cast %99 : vector<1x32x32xf32> to vector<32x32xf32>
    %101 = arith.truncf %100 : vector<32x32xf32> to vector<32x32xbf16>
    %cst_50 = arith.constant dense<0.000000e+00> : vector<8x32xf32>
    %102 = tpu.matmul %97, %101, %cst_50 {dimension_numbers = #tpu.dot_dimension_numbers<[1], [0], [0], [1], [0, 0, 1, 1], [], []>} : vector<8x32xbf16>, vector<32x32xbf16>, vector<8x32xf32> -> vector<8x32xf32>
    %c0_51 = arith.constant 0 : index
    %c0_52 = arith.constant 0 : index
    %103 = vector.load %arg8[%c0_51, %c0_52] : memref<4x32xf32, #tpu.memory_space<vmem>>, vector<1x32xf32>
    %104 = vector.broadcast %103 : vector<1x32xf32> to vector<8x32xf32>
    %105 = arith.addf %102, %104 : vector<8x32xf32>
    %c1_53 = arith.constant 1 : index
    %c0_54 = arith.constant 0 : index
    %c0_55 = arith.constant 0 : index
    %106 = vector.load %arg7[%c1_53, %c0_54, %c0_55] : memref<4x32x32xf32, #tpu.memory_space<vmem>>, vector<1x32x32xf32>
    %107 = vector.shape_cast %106 : vector<1x32x32xf32> to vector<32x32xf32>
    %108 = arith.truncf %107 : vector<32x32xf32> to vector<32x32xbf16>
    %cst_56 = arith.constant dense<0.000000e+00> : vector<8x32xf32>
    %109 = tpu.matmul %98, %108, %cst_56 {dimension_numbers = #tpu.dot_dimension_numbers<[1], [0], [0], [1], [0, 0, 1, 1], [], []>} : vector<8x32xbf16>, vector<32x32xbf16>, vector<8x32xf32> -> vector<8x32xf32>
    %c1_57 = arith.constant 1 : index
    %c0_58 = arith.constant 0 : index
    %110 = vector.load %arg8[%c1_57, %c0_58] : memref<4x32xf32, #tpu.memory_space<vmem>>, vector<1x32xf32>
    %111 = vector.broadcast %110 : vector<1x32xf32> to vector<8x32xf32>
    %112 = arith.addf %109, %111 : vector<8x32xf32>
    %c2_59 = arith.constant 2 : index
    %c0_60 = arith.constant 0 : index
    %c0_61 = arith.constant 0 : index
    %113 = vector.load %arg7[%c2_59, %c0_60, %c0_61] : memref<4x32x32xf32, #tpu.memory_space<vmem>>, vector<1x32x32xf32>
    %114 = vector.shape_cast %113 : vector<1x32x32xf32> to vector<32x32xf32>
    %115 = arith.truncf %114 : vector<32x32xf32> to vector<32x32xbf16>
    %cst_62 = arith.constant dense<0.000000e+00> : vector<8x32xf32>
    %116 = tpu.matmul %98, %115, %cst_62 {dimension_numbers = #tpu.dot_dimension_numbers<[1], [0], [0], [1], [0, 0, 1, 1], [], []>} : vector<8x32xbf16>, vector<32x32xbf16>, vector<8x32xf32> -> vector<8x32xf32>
    %c2_63 = arith.constant 2 : index
    %c0_64 = arith.constant 0 : index
    %117 = vector.load %arg8[%c2_63, %c0_64] : memref<4x32xf32, #tpu.memory_space<vmem>>, vector<1x32xf32>
    %118 = vector.broadcast %117 : vector<1x32xf32> to vector<8x32xf32>
    %119 = arith.addf %116, %118 : vector<8x32xf32>
    %cst_65 = arith.constant 0.353553385 : f32
    %120 = vector.broadcast %cst_65 : f32 to vector<8x32xf32>
    %121 = arith.mulf %105, %120 : vector<8x32xf32>
    %122 = vector.shape_cast %121 : vector<8x32xf32> to vector<8x4x8xf32>
    %123 = tpu.transpose %122, [1, 0, 2] : vector<8x4x8xf32> -> vector<4x8x8xf32>
    %124 = arith.truncf %123 : vector<4x8x8xf32> to vector<4x8x8xbf16>
    %125 = vector.shape_cast %112 : vector<8x32xf32> to vector<8x4x8xf32>
    %126 = tpu.transpose %125, [1, 0, 2] : vector<8x4x8xf32> -> vector<4x8x8xf32>
    %127 = arith.truncf %126 : vector<4x8x8xf32> to vector<4x8x8xbf16>
    %128 = vector.shape_cast %119 : vector<8x32xf32> to vector<8x4x8xf32>
    %129 = tpu.transpose %128, [1, 0, 2] : vector<8x4x8xf32> -> vector<4x8x8xf32>
    %130 = arith.truncf %129 : vector<4x8x8xf32> to vector<4x8x8xbf16>
    "tpu.trace_start"() <{level = 10 : i32, message = "hqd,hkd->hqk"}> : () -> ()
    %cst_66 = arith.constant dense<0.000000e+00> : vector<4x8x8xf32>
    %131 = tpu.matmul %124, %127, %cst_66 {dimension_numbers = #tpu.dot_dimension_numbers<[2], [2], [1], [1], [0, 0, 0, 1, 1, 1], [0], [0]>} : vector<4x8x8xbf16>, vector<4x8x8xbf16>, vector<4x8x8xf32> -> vector<4x8x8xf32>
    "tpu.trace_stop"() : () -> ()
    %132 = vector.shape_cast %96 : vector<8x8xf32> to vector<1x8x8xf32>
    %cst_67 = arith.constant 0.000000e+00 : f32
    %133 = vector.broadcast %cst_67 : f32 to vector<1x8x8xf32>
    %134 = arith.cmpf ogt, %132, %133 : vector<1x8x8xf32>
    %cst_68 = arith.constant -1.000000e+09 : f32
    %135 = vector.shape_cast %134 : vector<1x8x8xi1> to vector<1x8x8xi1>
    %136 = vector.broadcast %135 : vector<1x8x8xi1> to vector<4x8x8xi1>
    %137 = vector.broadcast %cst_68 : f32 to vector<4x8x8xf32>
    %138 = arith.select %136, %131, %137 : vector<4x8x8xi1>, vector<4x8x8xf32>
    %cst_69 = arith.constant dense<0xFF800000> : vector<4x8xf32>
    %139 = vector.multi_reduction <maximumf>, %138, %cst_69 [2] : vector<4x8x8xf32> to vector<4x8xf32>
    %140 = vector.shape_cast %139 : vector<4x8xf32> to vector<4x8x1xf32>
    %141 = vector.broadcast %140 : vector<4x8x1xf32> to vector<4x8x8xf32>
    %142 = arith.subf %138, %141 : vector<4x8x8xf32>
    %143 = math.exp %142 : vector<4x8x8xf32>
    %cst_70 = arith.constant dense<0.000000e+00> : vector<4x8xf32>
    %144 = vector.multi_reduction <add>, %143, %cst_70 [2] : vector<4x8x8xf32> to vector<4x8xf32>
    %145 = vector.shape_cast %144 : vector<4x8xf32> to vector<4x8x1xf32>
    %146 = tpu.reciprocal %145 {approx = true} : vector<4x8x1xf32> -> vector<4x8x1xf32>
    %147 = vector.broadcast %146 : vector<4x8x1xf32> to vector<4x8x8xf32>
    %148 = arith.mulf %143, %147 : vector<4x8x8xf32>
    %149 = arith.truncf %148 : vector<4x8x8xf32> to vector<4x8x8xbf16>
    "tpu.trace_start"() <{level = 10 : i32, message = "hqk,hkd->hqd"}> : () -> ()
    %cst_71 = arith.constant dense<0.000000e+00> : vector<4x8x8xf32>
    %150 = tpu.matmul %149, %130, %cst_71 {dimension_numbers = #tpu.dot_dimension_numbers<[2], [1], [1], [2], [0, 0, 0, 1, 1, 2], [0], [0]>} : vector<4x8x8xbf16>, vector<4x8x8xbf16>, vector<4x8x8xf32> -> vector<4x8x8xf32>
    "tpu.trace_stop"() : () -> ()
    %151 = tpu.transpose %150, [1, 0, 2] : vector<4x8x8xf32> -> vector<8x4x8xf32>
    %152 = vector.shape_cast %151 : vector<8x4x8xf32> to vector<8x32xf32>
    %153 = arith.truncf %152 : vector<8x32xf32> to vector<8x32xbf16>
    %c3_72 = arith.constant 3 : index
    %c0_73 = arith.constant 0 : index
    %c0_74 = arith.constant 0 : index
    %154 = vector.load %arg7[%c3_72, %c0_73, %c0_74] : memref<4x32x32xf32, #tpu.memory_space<vmem>>, vector<1x32x32xf32>
    %155 = vector.shape_cast %154 : vector<1x32x32xf32> to vector<32x32xf32>
    %156 = arith.truncf %155 : vector<32x32xf32> to vector<32x32xbf16>
    %cst_75 = arith.constant dense<0.000000e+00> : vector<8x32xf32>
    %157 = tpu.matmul %153, %156, %cst_75 {dimension_numbers = #tpu.dot_dimension_numbers<[1], [0], [0], [1], [0, 0, 1, 1], [], []>} : vector<8x32xbf16>, vector<32x32xbf16>, vector<8x32xf32> -> vector<8x32xf32>
    %c3_76 = arith.constant 3 : index
    %c0_77 = arith.constant 0 : index
    %158 = vector.load %arg8[%c3_76, %c0_77] : memref<4x32xf32, #tpu.memory_space<vmem>>, vector<1x32xf32>
    %159 = vector.broadcast %158 : vector<1x32xf32> to vector<8x32xf32>
    %160 = arith.addf %157, %159 : vector<8x32xf32>
    %161 = arith.addf %160, %94 : vector<8x32xf32>
    %c1_78 = arith.constant 1 : index
    %c0_79 = arith.constant 0 : index
    %162 = vector.load %arg9[%c1_78, %c0_79] : memref<3x32xf32, #tpu.memory_space<vmem>>, vector<1x32xf32>
    %c1_80 = arith.constant 1 : index
    %c0_81 = arith.constant 0 : index
    %163 = vector.load %arg10[%c1_80, %c0_81] : memref<3x32xf32, #tpu.memory_space<vmem>>, vector<1x32xf32>
    %cst_82 = arith.constant dense<0.000000e+00> : vector<8xf32>
    %164 = vector.multi_reduction <add>, %161, %cst_82 [1] : vector<8x32xf32> to vector<8xf32>
    %165 = vector.shape_cast %164 : vector<8xf32> to vector<8x1xf32>
    %cst_83 = arith.constant 3.200000e+01 : f32
    %166 = vector.broadcast %cst_83 : f32 to vector<8x1xf32>
    %167 = arith.divf %165, %166 : vector<8x1xf32>
    %168 = vector.broadcast %167 : vector<8x1xf32> to vector<8x32xf32>
    %169 = arith.subf %161, %168 : vector<8x32xf32>
    %170 = arith.mulf %169, %169 : vector<8x32xf32>
    %cst_84 = arith.constant dense<0.000000e+00> : vector<8xf32>
    %171 = vector.multi_reduction <add>, %170, %cst_84 [1] : vector<8x32xf32> to vector<8xf32>
    %172 = vector.shape_cast %171 : vector<8xf32> to vector<8x1xf32>
    %cst_85 = arith.constant 3.200000e+01 : f32
    %173 = vector.broadcast %cst_85 : f32 to vector<8x1xf32>
    %174 = arith.divf %172, %173 : vector<8x1xf32>
    %175 = vector.broadcast %167 : vector<8x1xf32> to vector<8x32xf32>
    %176 = arith.subf %161, %175 : vector<8x32xf32>
    %cst_86 = arith.constant 9.99999974E-6 : f32
    %177 = vector.broadcast %cst_86 : f32 to vector<8x1xf32>
    %178 = arith.addf %174, %177 : vector<8x1xf32>
    %179 = math.rsqrt %178 : vector<8x1xf32>
    %180 = vector.broadcast %179 : vector<8x1xf32> to vector<8x32xf32>
    %181 = arith.mulf %176, %180 : vector<8x32xf32>
    %182 = vector.broadcast %162 : vector<1x32xf32> to vector<8x32xf32>
    %183 = arith.mulf %181, %182 : vector<8x32xf32>
    %184 = vector.broadcast %163 : vector<1x32xf32> to vector<8x32xf32>
    %185 = arith.addf %183, %184 : vector<8x32xf32>
    %186 = arith.truncf %185 : vector<8x32xf32> to vector<8x32xbf16>
    %c0_87 = arith.constant 0 : index
    %c0_88 = arith.constant 0 : index
    %187 = vector.load %arg11[%c0_87, %c0_88] : memref<32x64xf32, #tpu.memory_space<vmem>>, vector<32x64xf32>
    %188 = arith.truncf %187 : vector<32x64xf32> to vector<32x64xbf16>
    %cst_89 = arith.constant dense<0.000000e+00> : vector<8x64xf32>
    %189 = tpu.matmul %186, %188, %cst_89 {dimension_numbers = #tpu.dot_dimension_numbers<[1], [0], [0], [1], [0, 0, 1, 1], [], []>} : vector<8x32xbf16>, vector<32x64xbf16>, vector<8x64xf32> -> vector<8x64xf32>
    %c0_90 = arith.constant 0 : index
    %c0_91 = arith.constant 0 : index
    %190 = vector.load %arg12[%c0_90, %c0_91] : memref<1x64xf32, #tpu.memory_space<vmem>>, vector<1x64xf32>
    %191 = vector.broadcast %190 : vector<1x64xf32> to vector<8x64xf32>
    %192 = arith.addf %189, %191 : vector<8x64xf32>
    %cst_92 = arith.constant 0.000000e+00 : f32
    %193 = vector.broadcast %cst_92 : f32 to vector<8x64xf32>
    %194 = arith.maximumf %192, %193 : vector<8x64xf32>
    %195 = arith.truncf %194 : vector<8x64xf32> to vector<8x64xbf16>
    %c0_93 = arith.constant 0 : index
    %c0_94 = arith.constant 0 : index
    %196 = vector.load %arg13[%c0_93, %c0_94] : memref<64x32xf32, #tpu.memory_space<vmem>>, vector<64x32xf32>
    %197 = arith.truncf %196 : vector<64x32xf32> to vector<64x32xbf16>
    %cst_95 = arith.constant dense<0.000000e+00> : vector<8x32xf32>
    %198 = tpu.matmul %195, %197, %cst_95 {dimension_numbers = #tpu.dot_dimension_numbers<[1], [0], [0], [1], [0, 0, 1, 1], [], []>} : vector<8x64xbf16>, vector<64x32xbf16>, vector<8x32xf32> -> vector<8x32xf32>
    %c0_96 = arith.constant 0 : index
    %c0_97 = arith.constant 0 : index
    %199 = vector.load %arg14[%c0_96, %c0_97] : memref<1x32xf32, #tpu.memory_space<vmem>>, vector<1x32xf32>
    %200 = vector.broadcast %199 : vector<1x32xf32> to vector<8x32xf32>
    %201 = arith.addf %198, %200 : vector<8x32xf32>
    %202 = arith.addf %201, %185 : vector<8x32xf32>
    %c2_98 = arith.constant 2 : index
    %c0_99 = arith.constant 0 : index
    %203 = vector.load %arg9[%c2_98, %c0_99] : memref<3x32xf32, #tpu.memory_space<vmem>>, vector<1x32xf32>
    %c2_100 = arith.constant 2 : index
    %c0_101 = arith.constant 0 : index
    %204 = vector.load %arg10[%c2_100, %c0_101] : memref<3x32xf32, #tpu.memory_space<vmem>>, vector<1x32xf32>
    %cst_102 = arith.constant dense<0.000000e+00> : vector<8xf32>
    %205 = vector.multi_reduction <add>, %202, %cst_102 [1] : vector<8x32xf32> to vector<8xf32>
    %206 = vector.shape_cast %205 : vector<8xf32> to vector<8x1xf32>
    %cst_103 = arith.constant 3.200000e+01 : f32
    %207 = vector.broadcast %cst_103 : f32 to vector<8x1xf32>
    %208 = arith.divf %206, %207 : vector<8x1xf32>
    %209 = vector.broadcast %208 : vector<8x1xf32> to vector<8x32xf32>
    %210 = arith.subf %202, %209 : vector<8x32xf32>
    %211 = arith.mulf %210, %210 : vector<8x32xf32>
    %cst_104 = arith.constant dense<0.000000e+00> : vector<8xf32>
    %212 = vector.multi_reduction <add>, %211, %cst_104 [1] : vector<8x32xf32> to vector<8xf32>
    %213 = vector.shape_cast %212 : vector<8xf32> to vector<8x1xf32>
    %cst_105 = arith.constant 3.200000e+01 : f32
    %214 = vector.broadcast %cst_105 : f32 to vector<8x1xf32>
    %215 = arith.divf %213, %214 : vector<8x1xf32>
    %216 = vector.broadcast %208 : vector<8x1xf32> to vector<8x32xf32>
    %217 = arith.subf %202, %216 : vector<8x32xf32>
    %cst_106 = arith.constant 9.99999974E-6 : f32
    %218 = vector.broadcast %cst_106 : f32 to vector<8x1xf32>
    %219 = arith.addf %215, %218 : vector<8x1xf32>
    %220 = math.rsqrt %219 : vector<8x1xf32>
    %221 = vector.broadcast %220 : vector<8x1xf32> to vector<8x32xf32>
    %222 = arith.mulf %217, %221 : vector<8x32xf32>
    %223 = vector.broadcast %203 : vector<1x32xf32> to vector<8x32xf32>
    %224 = arith.mulf %222, %223 : vector<8x32xf32>
    %225 = vector.broadcast %204 : vector<1x32xf32> to vector<8x32xf32>
    %226 = arith.addf %224, %225 : vector<8x32xf32>
    %c0_107 = arith.constant 0 : index
    %c0_108 = arith.constant 0 : index
    %c0_109 = arith.constant 0 : index
    %227 = vector.load %arg15[%c0_107, %c0_108, %c0_109] : memref<1x8x32xf32, #tpu.memory_space<vmem>>, vector<1x8x32xf32>
    %228 = vector.shape_cast %227 : vector<1x8x32xf32> to vector<8x32xf32>
    %229 = vector.shape_cast %226 : vector<8x32xf32> to vector<1x8x32xf32>
    tpu.vector_store %arg15[%c0_107, %c0_108, %c0_109], %229 {strides = array<i32>} : memref<1x8x32xf32, #tpu.memory_space<vmem>>, vector<1x8x32xf32>,
    return
  }
  func.func @transform_0(%arg0: i32) -> (i32, i32, i32) {
    %c0_i32 = arith.constant 0 : i32
    %c0_i32_0 = arith.constant 0 : i32
    %c0_i32_1 = arith.constant 0 : i32
    return %arg0, %c0_i32, %c0_i32_0 : i32, i32, i32
  }
  func.func @transform_1(%arg0: i32) -> (i32, i32, i32) {
    %c0_i32 = arith.constant 0 : i32
    %c0_i32_0 = arith.constant 0 : i32
    %c0_i32_1 = arith.constant 0 : i32
    return %arg0, %c0_i32, %c0_i32_0 : i32, i32, i32
  }
  func.func @transform_2(%arg0: i32) -> (i32, i32, i32) {
    %c0_i32 = arith.constant 0 : i32
    %c0_i32_0 = arith.constant 0 : i32
    %c0_i32_1 = arith.constant 0 : i32
    return %arg0, %c0_i32, %c0_i32_0 : i32, i32, i32
  }
  func.func @transform_3(%arg0: i32) -> (i32, i32, i32) {
    %c0_i32 = arith.constant 0 : i32
    %c0_i32_0 = arith.constant 0 : i32
    %c0_i32_1 = arith.constant 0 : i32
    return %arg0, %c0_i32, %c0_i32_0 : i32, i32, i32
  }
  func.func @transform_4(%arg0: i32) -> (i32, i32, i32) {
    %c0_i32 = arith.constant 0 : i32
    %c0_i32_0 = arith.constant 0 : i32
    %c0_i32_1 = arith.constant 0 : i32
    %c0_i32_2 = arith.constant 0 : i32
    return %c0_i32, %c0_i32_0, %c0_i32_1 : i32, i32, i32
  }
  func.func @transform_5(%arg0: i32) -> (i32, i32) {
    %c0_i32 = arith.constant 0 : i32
    %c0_i32_0 = arith.constant 0 : i32
    %c0_i32_1 = arith.constant 0 : i32
    return %c0_i32, %c0_i32_0 : i32, i32
  }
  func.func @transform_6(%arg0: i32) -> (i32, i32, i32) {
    %c0_i32 = arith.constant 0 : i32
    %c0_i32_0 = arith.constant 0 : i32
    %c0_i32_1 = arith.constant 0 : i32
    %c0_i32_2 = arith.constant 0 : i32
    return %c0_i32, %c0_i32_0, %c0_i32_1 : i32, i32, i32
  }
  func.func @transform_7(%arg0: i32) -> (i32, i32) {
    %c0_i32 = arith.constant 0 : i32
    %c0_i32_0 = arith.constant 0 : i32
    %c0_i32_1 = arith.constant 0 : i32
    return %c0_i32, %c0_i32_0 : i32, i32
  }
  func.func @transform_8(%arg0: i32) -> (i32, i32) {
    %c0_i32 = arith.constant 0 : i32
    %c0_i32_0 = arith.constant 0 : i32
    %c0_i32_1 = arith.constant 0 : i32
    return %c0_i32, %c0_i32_0 : i32, i32
  }
  func.func @transform_9(%arg0: i32) -> (i32, i32) {
    %c0_i32 = arith.constant 0 : i32
    %c0_i32_0 = arith.constant 0 : i32
    %c0_i32_1 = arith.constant 0 : i32
    return %c0_i32, %c0_i32_0 : i32, i32
  }
  func.func @transform_10(%arg0: i32) -> (i32, i32) {
    %c0_i32 = arith.constant 0 : i32
    %c0_i32_0 = arith.constant 0 : i32
    %c0_i32_1 = arith.constant 0 : i32
    return %c0_i32, %c0_i32_0 : i32, i32
  }
  func.func @transform_11(%arg0: i32) -> (i32, i32) {
    %c0_i32 = arith.constant 0 : i32
    %c0_i32_0 = arith.constant 0 : i32
    %c0_i32_1 = arith.constant 0 : i32
    return %c0_i32, %c0_i32_0 : i32, i32
  }
  func.func @transform_12(%arg0: i32) -> (i32, i32) {
    %c0_i32 = arith.constant 0 : i32
    %c0_i32_0 = arith.constant 0 : i32
    %c0_i32_1 = arith.constant 0 : i32
    return %c0_i32, %c0_i32_0 : i32, i32
  }
  func.func @transform_13(%arg0: i32) -> (i32, i32) {
    %c0_i32 = arith.constant 0 : i32
    %c0_i32_0 = arith.constant 0 : i32
    %c0_i32_1 = arith.constant 0 : i32
    return %c0_i32, %c0_i32_0 : i32, i32
  }
  func.func @transform_14(%arg0: i32) -> (i32, i32, i32) {
    %c0_i32 = arith.constant 0 : i32
    %c0_i32_0 = arith.constant 0 : i32
    %c0_i32_1 = arith.constant 0 : i32
    return %arg0, %c0_i32, %c0_i32_0 : i32, i32, i32
  }
}

</mosaic_0001>

<bundles_post_ra>
// kernel: tpu_custom_call.1
= control target key start
LH: loop header
LB: loop body
LE: loop exit
PB: predicated region body
PF: predicated region fallthrough
CT: control target
= control target key end

     0   :  { %s4751_s0 = inlined_call_operand.vmem [shape: f32[2,8,32], index: 0, kind: input, shape index: {}]   ;;  %s4752_s1 = inlined_call_operand.vmem [shape: f32[2,8,32], index: 1, kind: input, shape index: {}]   ;;  %s4753_s2 = inlined_call_operand.vmem [shape: f32[2,8,8], index: 2, kind: input, shape index: {}]   ;;  %s4754_s3 = inlined_call_operand.vmem [shape: f32[2,8,8], index: 3, kind: input, shape index: {}]   ;;  %s4755_s4 = inlined_call_operand.hbm [shape: f32[4,32,32], index: 4, kind: input, shape index: {}]   ;;  %s4756_s5 = inlined_call_operand.vmem [shape: f32[4,32], index: 5, kind: input, shape index: {}]   ;;  %s4757_s6 = inlined_call_operand.hbm [shape: f32[4,32,32], index: 6, kind: input, shape index: {}]   ;;  %s4758_s7 = inlined_call_operand.vmem [shape: f32[4,32], index: 7, kind: input, shape index: {}]   ;;  %s4759_s8 = inlined_call_operand.vmem [shape: f32[3,32], index: 8, kind: input, shape index: {}]   ;;  %s4760_s9 = inlined_call_operand.hbm [shape: f32[3,32], index: 9, kind: input, shape index: {}]   ;;  %s4761_s10 = inlined_call_operand.vmem [shape: f32[32,64], index: 10, kind: input, shape index: {}]   ;;  %s4762_s11 = inlined_call_operand.vmem [shape: f32[1,64], index: 11, kind: input, shape index: {}]   ;;  %s4763_s12 = inlined_call_operand.vmem [shape: f32[64,32], index: 12, kind: input, shape index: {}]   ;;  %s4764_s13 = inlined_call_operand.vmem [shape: f32[1,32], index: 13, kind: input, shape index: {}]   ;;  %s4765_s14 = inlined_call_operand.hbm [shape: f32[2,8,32], index: 14, kind: output, shape index: {}]  }
   0x1   :  { %4779 = sst [smem:[#allocation20_spill]] %s4764_s13 }
   0x2   :  { %4780 = sst [smem:[#allocation21_spill]] %s4765_s14 }
   0x3   :  { %19 = vsyncpa [#allocation3], 0 }
   0x4   :  { %20 = vsyncpa [#allocation6], 0 }
   0x5   :  { %21 = vsyncpa [#allocation4], 0 }
   0x6   :  { %23 = vsyncpa [#allocation4 + $0x1], 0  ;;  %s4080_s29 = smov 0   ;;  %s4082_s30 = smov 0  }
   0x7   :  { %s4084_s15 = smov 0   ;;  %s4086_s16 = smov 0  }
   0x8 LB: > { %4781 = sst [smem:[#allocation12_spill]] %s3975_s29  ;;  %s4101_s17 = sadd.s32 4294967295, %s3987_s16   ;;  %s3987_s16 = sphi %s4086_s16, %s4809_s16   ;;  %s3983_s15 = sphi %s4084_s15, %s4812_s15   ;;  %s3979_s30 = sphi %s4082_s30, %s4811_s30   ;;  %s3975_s29 = sphi %s4080_s29, %s4810_s29  }
   0x9   : > { %4782 = sst [smem:[#allocation13_spill]] %s3979_s30  ;;  %s3392_s18 = sadd.s32 4294967294, %s3987_s16  }
   0xa   : > { %4783 = sst [smem:[#allocation14_spill]] %s3983_s15  ;;  %s4105_s19 = sadd.s32 1, %s3987_s16  }
   0xb   : > { %4784 = sst [smem:[#allocation15_spill]] %s3987_s16  ;;  %s350_s20 = sadd.s32 1, %s3983_s15 }
   0xc   : > { %4785 = sst [smem:[#allocation16_spill]] %s4105_s19  ;;  %s347_s21 = ssub.s32 %s3987_s16, %s4105_s19 }
   0xd   : > { %p360_p0 = scmp.ne.s32.totalorder %s3983_s15, %s3979_s30  ;;  %p348_p1 = scmp.eq.s32.totalorder %s347_s21, 0 }
   0xe   : > { %p361_p2 = scmp.eq.s32.totalorder %s4101_s17, 1  ;;  %p366_p3 = scmp.ne.s32.totalorder %s3979_s30, %s3975_s29 }
   0xf   : > { %p367_p4 = scmp.eq.s32.totalorder %s3392_s18, 1  ;;  %p3393_p7 = scmp.ge.s32.totalorder %s3987_s16, 1 }
  0x10   : > { %s4116_s22 = scalar_select %p348_p1, %s3983_s15, %s350_s20  }
  0x11   : > { %p4118_p5 = por %p361_p2, %p360_p0  ;;  %p4122_p6 = por %p367_p4, %p366_p3 }
  0x12   : > { %4786 = sst [smem:[#allocation17_spill]] %s4116_s22  ;;  %p374_p8 = scmp.lt.s32.totalorder %s3987_s16, 3 }
  0x13   : > { %s4787_s23 = scalar_select %p4118_p5, 1, 0 }
  0x14   : > { %s4789_s24 = scalar_select %p4122_p6, 1, 0 }
  0x15   : > { %4788 = sst [smem:[#allocation18_spill]] %s4787_s23  ;;  %p4772_p9 = scmp.eq.s32.totalorder %s4101_s17, 0 }
  0x16   : > { %4790 = sst [smem:[#allocation19_spill]] %s4789_s24  ;;  %p4129_p10 = pnand %p3393_p7, %p374_p8 }
  0x17   : > { %s3989_s26 = smov [#allocation5]   ;;  %s3990_s18 = smov [#allocation2]  }
  0x18   : > { %s4791_s25 = scalar_select %p4129_p10, 1, 0 }
  0x19   : > { %p3727_p11 = pneg %p4129_p10  ;;  %s402_s27 = sshll.u32 %s3989_s26, 4  ;;  %s4135_s27 = int_to_ptr.vmem [resolvable:$true] %s402_s27 }
  0x1a   : > { %s386_s20 = sshll.u32 %s3990_s18, 4  ;;  %s3991_s21 = smov [#allocation7]   ;;  %s4143_s20 = int_to_ptr.vmem [resolvable:$true] %s386_s20 }
  0x1b   : > { %p4139_p12 = pnand %p4772_p9, %p3727_p11  ;;  %s4145_s22 = sshll.u32 %s3991_s21, 4  ;;  %s423_s22 = int_to_ptr.vmem [resolvable:$true] %s4145_s22 }
  0x1c   : > { %s3833_s24 = scalar_lea.hbm %s4757_s6, 2048 }
  0x1d   : > { %p3834_p13 = scmp.ne.s32.totalorder %s4757_s6, %s3833_s24  ;;  %p4155_p0 = pneg %p4139_p12 }
  0x1e   : > { %p3840_p3 = scmp.lt.u32.totalorder %s3833_s24, %s4757_s6 }
  0x1f   : > { %p3836_p1 = pnand %p4155_p0, %p3834_p13 }
  0x21   : > { %p3837_p2 = pneg %p3836_p1 }
  0x23   : > { %p3842_p4 = pnand %p3840_p3, %p3837_p2 }
  0x25   : > { %3845 = shalt.err (!%p3842_p4)
}
  0x26   : > { %s3846_s29 = scalar_lea.vmem %s4135_s27, 2048  ;;  %p3854_p9 = scmp.lt.s32.totalorder %s4135_s27, %s4135_s27 }
  0x27   : > { %p3847_p7 = scmp.ne.s32.totalorder %s4135_s27, %s3846_s29  ;;  %p3855_p6 = scmp.lt.s32.totalorder %s3846_s29, %s3846_s29 }
  0x29   : > { %p3849_p8 = pnand %p3847_p7, %p4155_p0  ;;  %p3856_p13 = por %p3855_p6, %p3854_p9 }
  0x2b   : > { %p3850_p11 = pneg %p3849_p8 }
  0x2d   : > { %p3857_p1 = pnand %p3856_p13, %p3850_p11 }
  0x2f   : > { %3860 = shalt.err (!%p3857_p1)
}
  0x30   : > { %s3992_s15 = smov 128   ;;  %s3993_s19 = smov 8  }
  0x31   : > { %3733 = dma.hbm_to_vmem [thread:$0]  (!%p4139_p12), %s4757_s6, 2048, %s4135_s27, [#allocation6], %s3992_s15, %s3992_s15, %s3993_s19  }
  0x32   : > { %s3861_s14 = scalar_lea.hbm %s4755_s4, 2048 }
  0x33   : > { %p3862_p6 = scmp.ne.s32.totalorder %s4755_s4, %s3861_s14  ;;  %p3868_p3 = scmp.lt.u32.totalorder %s3861_s14, %s4755_s4 }
  0x35   : > { %p3864_p9 = pnand %p3862_p6, %p4155_p0 }
  0x37   : > { %p3865_p2 = pneg %p3864_p9 }
  0x39   : > { %p3870_p4 = pnand %p3868_p3, %p3865_p2 }
  0x3b   : > { %3873 = shalt.err (!%p3870_p4)
}
  0x3c   : > { %s3874_s27 = scalar_lea.vmem %s4143_s20, 2048  ;;  %p3882_p13 = scmp.lt.s32.totalorder %s4143_s20, %s4143_s20 }
  0x3d   : > { %p3875_p7 = scmp.ne.s32.totalorder %s4143_s20, %s3874_s27  ;;  %p3883_p1 = scmp.lt.s32.totalorder %s3874_s27, %s3874_s27 }
  0x3f   : > { %p3877_p8 = pnand %p3875_p7, %p4155_p0  ;;  %p3884_p6 = por %p3883_p1, %p3882_p13 }
  0x41   : > { %p3878_p11 = pneg %p3877_p8 }
  0x43   : > { %p3885_p9 = pnand %p3884_p6, %p3878_p11 }
  0x45   : > { %3888 = shalt.err (!%p3885_p9)
}
  0x46   : > { %3730 = dma.hbm_to_vmem [thread:$0]  (!%p4139_p12), %s4755_s4, 2048, %s4143_s20, [#allocation3], %s3992_s15, %s3992_s15, %s3993_s19  }
  0x47   : > { %s3889_s24 = scalar_lea.hbm %s4760_s9, 64 }
  0x48   : > { %p3890_p2 = scmp.ne.s32.totalorder %s4760_s9, %s3889_s24  ;;  %p3896_p7 = scmp.lt.u32.totalorder %s3889_s24, %s4760_s9 }
  0x4a   : > { %p3892_p3 = pnand %p3890_p2, %p4155_p0 }
  0x4c   : > { %p3893_p4 = pneg %p3892_p3 }
  0x4e   : > { %p3898_p8 = pnand %p3896_p7, %p3893_p4 }
  0x50   : > { %3901 = shalt.err (!%p3898_p8)
}
  0x51   : > { %s3902_s27 = scalar_lea.vmem %s423_s22, 64  ;;  %p3910_p6 = scmp.lt.s32.totalorder %s423_s22, %s423_s22 }
  0x52   : > { %p3903_p11 = scmp.ne.s32.totalorder %s423_s22, %s3902_s27  ;;  %p3911_p9 = scmp.lt.s32.totalorder %s3902_s27, %s3902_s27 }
  0x54   : > { %p3905_p13 = pnand %p3903_p11, %p4155_p0  ;;  %p3912_p5 = por %p3911_p9, %p3910_p6 }
  0x56   : > { %p3906_p1 = pneg %p3905_p13 }
  0x58   : > { %p3913_p10 = pnand %p3912_p5, %p3906_p1 }
  0x5a   : > { %3916 = shalt.err (!%p3913_p10)
}
  0x5b   : > { %3736 = dma.hbm_to_vmem [thread:$0]  (!%p4139_p12), %s4760_s9, 64, %s423_s22, [#allocation6]  }
  0x5c   : > { %p4794_p2 = scmp.ne.s32.totalorder %s4791_s25, 0 }
  0x5d   : > { %p4795_p3 = scmp.eq.s32.totalorder (!%p4794_p2), %s4101_s17, 0 }
  0x5e   : > { %475 = sbr.rel (%p4794_p2) target bundleno = 4526 (0x11ae), region = 76 }
  0x65   : > { %3962 = dma.done.wait (%p4795_p3), [#allocation3], 2048   ;;  %p4796_p0 = pmov %p4795_p3 }
  0x67   : > { %3964 = vsyncadd (%p4796_p0), [#allocation3], 4294965248  ;;  %p4797_p4 = pmov %p4796_p0 }
  0x68   : > { %p4798_p5 = pmov %p4796_p0 }
  0x69   : > { %3966 = dma.done.wait (%p4797_p4), [#allocation6], 2112  }
  0x6a   : > { %3968 = vsyncadd (%p4798_p5), [#allocation6], 4294965184  ;;  %p540_p10 = scmp.lt.s32.totalorder %s4101_s17, 1  ;;  %v3994_v0 = vmov 0.0   ;;  %vm3995_vm0 = vmmov 0   ;;  %v617_v1 = vld [vmem:[#allocation2 + $0x20] sm:$0xff]  ;;  %v736_v36 = vlaneseq }
  0x6b   : > { %3541 = vmatprep.subr.bf16.mxu1 %v3994_v0  ;;  %3533 = vmatprep.subr.bf16.mxu0 %v3994_v0  ;;  %v618_v2 = vld [vmem:[#allocation2 + $0x28] sm:$0xff]  ;;  %v561_v3 = vld [vmem:[#allocation2] sm:$0xff]  ;;  %v619_v6 = vld [vmem:[#allocation2 + $0x30] sm:$0xff]  ;;  %vm572_vm1 = vcmask 261120   ;;  %s3996_s24 = smov 104   ;;  %s3997_s26 = smov 120  }
  0x6c   : > { %3545 = vmatprep.mubr.msk.bf16.mxu1 %vm3995_vm0, %v3994_v0  ;;  %s541_s16 = scalar_select %p540_p10, %s4101_s17, 1  ;;  %3537 = vmatprep.mubr.msk.bf16.mxu0 %vm3995_vm0, %v3994_v0  ;;  %v621_v4 = vpack.c.bf16 %v618_v2, %v617_v1  ;;  %v562_v5 = vld [vmem:[#allocation2 + $0x8] sm:$0xff]  ;;  %v620_v7 = vld [vmem:[#allocation2 + $0x38] sm:$0xff]  ;;  %v563_v9 = vld [vmem:[#allocation2 + $0x10] sm:$0xff]  ;;  %v3999_v34 = vmov 1983009808  }
  0x6d   : > { %v565_v8 = vpack.c.bf16 %v562_v5, %v561_v3  ;;  %v564_v10 = vld [vmem:[#allocation2 + $0x18] sm:$0xff]  ;;  %v622_v11 = vpack.c.bf16 %v620_v7, %v619_v6  ;;  %v3409_v15 = vld [vmem:[%s4756_s5 + $0x1] ss:$0 sm:$0xff]  ;;  %v3407_v16 = vld [vmem:[%s4756_s5] ss:$0 sm:$0xff]  ;;  %s3998_s18 = smov 112   ;;  %v734_v35 = vunpack.c.l.s4 %v3999_v34 }
  0x6e   : > { %s4236_s22 = sshll.u32 %s541_s16, 3  ;;  %3542 = vmatpush3.bf16.msra.mxu1 %v621_v4  ;;  %v566_v13 = vpack.c.bf16 %v564_v10, %v563_v9  ;;  %v669_v18 = vld [vmem:[#allocation2 + $0x40] sm:$0xff]  ;;  %v670_v19 = vld [vmem:[#allocation2 + $0x48] sm:$0xff]  ;;  %v671_v31 = vld [vmem:[#allocation2 + $0x50] sm:$0xff]  ;;  %v4000_v37 = vmov 1934713408  }
  0x6f   : > { %s543_s19 = scalar_lea.vmem %s4751_s0, %s4236_s22  ;;  %3534 = vmatpush3.bf16.msra.mxu0 %v565_v8  ;;  %3543 = vmatprep.subr.bf16.mxu1 %v3994_v0  ;;  %v673_v23 = vpack.c.bf16 %v670_v19, %v669_v18  ;;  %v672_v32 = vld [vmem:[#allocation2 + $0x58] sm:$0xff]  ;;  %v766_v38 = vunpack.c.l.s4 %v4000_v37  ;;  %v735_v39 = vunpack.c.0.s8 %v734_v35  ;;  %v737_v40 = vshrl.u32 %v736_v36, 7  ;;  %s551_s27 = scalar_lea.vmem %s4753_s2, %s4236_s22 }
  0x70   : > { %v4242_v12 = vld [vmem:[%s543_s19] sm:$0xff]  ;;  %3535 = vmatprep.subr.bf16.mxu0 %v3994_v0  ;;  %v674_v33 = vpack.c.bf16 %v672_v32, %v671_v31  ;;  %vm1171_vm2 = vcmask 64512   ;;  %vm1414_vm4 = vcmask 1043456   ;;  %s4001_s16 = smov 16   ;;  %s4002_s25 = smov 8   ;;  %vm1745_vm5 = vcmask 130048  }
  0x71   : > { %v560_v14 = vpack.c.bf16 %v4242_v12, %v4242_v12  ;;  %v767_v43 = vunpack.c.0.s8 %v766_v38  ;;  %v4273_v44 = vsub.s32 %v735_v39, %v737_v40  ;;  %s4003_s28 = smov 24   ;;  %vm1747_vm6 = vcmask 195584   ;;  %s547_s23 = scalar_lea.vmem %s4752_s1, %s4236_s22 }
  0x72   : > { %3544 = vmatpush3.bf16.msra.mxu1 %v622_v11  ;;  %s555_s30 = scalar_lea.vmem %s4754_s3, %s4236_s22  ;;  %vm3181_vm8 = vcmask 523264   ;;  %s4799_s22 = sld [smem:[#allocation20_spill]] }
  0x73   : > { %3536 = vmatpush3.bf16.msra.mxu0 %v566_v13  ;;  %3557 = vmatprep.subr.bf16.mxu1 %v3994_v0  ;;  %v4275_v51 = vsub.s32 %v767_v43, %v737_v40  ;;  %s4802_s15 = sld [smem:[#allocation21_spill]] }
  0x74   : > { %3549 = vmatprep.subr.bf16.mxu0 %v3994_v0 }
  0x75   : > { %3546 = vmatmul.mubr.msk.bf16.vlgmr.msra.gmra.mrb[0].mxu1 %vm572_vm1, %v560_v14 }
  0x76   : > { %3538 = vmatmul.mubr.msk.bf16.vlgmr.msra.gmra.mrb[0].mxu0 %vm572_vm1, %v560_v14  ;;  %3559 = vmatprep.mubr.msk.bf16.mxu1 %vm3995_vm0, %v3994_v0 }
  0x77   : > { %3553 = vmatprep.mubr.msk.bf16.mxu0 %vm3995_vm0, %v3994_v0  ;;  %3550 = vmatpush3.bf16.msra.mxu0 %v673_v23 }
  0x78   : > { %3551 = vmatprep.subr.bf16.mxu0 %v3994_v0 }
  0x79   : > { %s4803_s19 = smov %s4802_s15 }
  0x7b   : > { %3552 = vmatpush3.bf16.msra.mxu0 %v674_v33 }
  0x7c   : > { %3563 = vmatprep.subr.bf16.mxu0 %v3994_v0 }
  0x7e   : > { %3554 = vmatmul.mubr.msk.bf16.vlgmr.msra.gmra.mrb[4].mxu0 %vm572_vm1, %v560_v14 }
  0x7f   : > { %3565 = vmatprep.mubr.msk.bf16.mxu0 %vm3995_vm0, %v3994_v0 }
 0x148   : > { %v662_v17 = vpop.f32.mrb[0].mxu1 }
 0x149   : > { %v663_v20 = vadd.f32 %v3409_v15, %v662_v17  ;;  %v3547_v21 = vpop.f32.mrb[1].mxu1  ;;  %v610_v22 = vpop.f32.mrb[0].mxu0 }
 0x14a   : > { %v611_v24 = vadd.f32 %v3407_v16, %v610_v22  ;;  %v665_v25 = vpop.f32.mrb[2].mxu1  ;;  %v3539_v26 = vpop.f32.mrb[1].mxu0 }
 0x14b   : > { %878 = vrot.lane.b32.xlu1 %v663_v20, %s3996_s24  ;;  %872 = vrot.lane.b32.xlu0 %v663_v20, %s3997_s26  ;;  %v3548_v27 = vpop.f32.mrb[3].mxu1  ;;  %v613_v28 = vpop.f32.mrb[2].mxu0 }
 0x14c   : > { %v720_v29 = vmul.f32 0.35355338, %v611_v24  ;;  %v3540_v30 = vpop.f32.mrb[3].mxu0 }
 0x14f   : > { %875 = vrot.lane.b32.xlu0 %v663_v20, %s3998_s18  ;;  %722 = vrot.lane.b32.xlu1 %v720_v29, %s3997_s26 }
 0x153   : > { %725 = vrot.lane.b32.xlu0 %v720_v29, %s3998_s18  ;;  %728 = vrot.lane.b32.xlu1 %v720_v29, %s3996_s24 }
 0x1bd   : > { %v879_v41 = vpop.permute.xlu1 %878  ;;  %v873_v42 = vpop.permute.xlu0 %872 }
 0x1be   : > { %v897_v45 = vcombine.low %v873_v42, %v879_v41  ;;  %v898_v46 = vcombine.high %v873_v42, %v879_v41 }
 0x1c0   : > { %v905_v52 = vrot.slane %v897_v45, %v4273_v44  ;;  %v912_v53 = vrot.slane %v898_v46, %v4273_v44 }
 0x1c1   : > { %v876_v47 = vpop.permute.xlu0 %875  ;;  %v723_v48 = vpop.permute.xlu1 %722 }
 0x1c2   : > { %v881_v49 = vcombine.low %v663_v20, %v876_v47  ;;  %v882_v50 = vcombine.high %v663_v20, %v876_v47 }
 0x1c4   : > { %v889_v54 = vrot.slane %v881_v49, %v4273_v44  ;;  %v896_v55 = vrot.slane %v882_v50, %v4273_v44 }
 0x1c5   : > { %v726_v56 = vpop.permute.xlu0 %725  ;;  %v729_v57 = vpop.permute.xlu1 %728 }
 0x1c6   : > { %v913_v58 = vcombine.low %v889_v54, %v905_v52  ;;  %v914_v59 = vcombine.high %v889_v54, %v905_v52  ;;  %v929_v60 = vcombine.low %v896_v55, %v912_v53  ;;  %v930_v61 = vcombine.high %v896_v55, %v912_v53 }
 0x1c7   : > { %v731_v62 = vcombine.low %v720_v29, %v726_v56  ;;  %v732_v63 = vcombine.high %v720_v29, %v726_v56  ;;  %v747_v1 = vcombine.low %v723_v48, %v729_v57  ;;  %v748_v2 = vcombine.high %v723_v48, %v729_v57 }
 0x1c8   : > { %v921_v3 = vrot.slane %v913_v58, %v4275_v51  ;;  %v928_v4 = vrot.slane %v914_v59, %v4275_v51  ;;  %v937_v5 = vrot.slane %v929_v60, %v4275_v51  ;;  %v944_v6 = vrot.slane %v930_v61, %v4275_v51 }
 0x1c9   : > { %v739_v7 = vrot.slane %v731_v62, %v4273_v44  ;;  %v746_v8 = vrot.slane %v732_v63, %v4273_v44  ;;  %v755_v9 = vrot.slane %v747_v1, %v4273_v44  ;;  %v762_v10 = vrot.slane %v748_v2, %v4273_v44 }
 0x1ca   : > { %v949_v11 = vcombine.low %v921_v3, %v928_v4  ;;  %v3415_v13 = vcombine.high %v921_v3, %v928_v4  ;;  %v965_v14 = vcombine.low %v937_v5, %v944_v6  ;;  %v3416_v15 = vcombine.high %v937_v5, %v944_v6 }
 0x1cb   : > { %v763_v16 = vcombine.low %v739_v7, %v755_v9  ;;  %v764_v17 = vcombine.high %v739_v7, %v755_v9  ;;  %v779_v18 = vcombine.low %v746_v8, %v762_v10  ;;  %v780_v19 = vcombine.high %v746_v8, %v762_v10 }
 0x1cc   : > { %v956_v20 = vrot.slane %v949_v11, %v4273_v44  ;;  %v964_v21 = vrot.slane %v3415_v13, %v4273_v44  ;;  %v972_v22 = vrot.slane %v965_v14, %v4273_v44  ;;  %v980_v23 = vrot.slane %v3416_v15, %v4273_v44  ;;  %v714_v11 = vpop.f32.mrb[4].mxu0 }
 0x1cd   : > { %v771_v24 = vrot.slane %v763_v16, %v4275_v51  ;;  %v778_v25 = vrot.slane %v764_v17, %v4275_v51  ;;  %v787_v26 = vrot.slane %v779_v18, %v4275_v51  ;;  %v794_v27 = vrot.slane %v780_v19, %v4275_v51  ;;  %v3555_v13 = vpop.f32.mrb[5].mxu0  ;;  %v559_v16 = vld [vmem:[%s551_s27] sm:$0xff] }
 0x1ce   : > { %v981_v28 = vcombine.low %v956_v20, %v964_v21  ;;  %v997_v29 = vcombine.low %v972_v22, %v980_v23  ;;  %v982_v30 = vcombine.high %v956_v20, %v964_v21  ;;  %v998_v31 = vcombine.high %v972_v22, %v980_v23  ;;  %v717_v14 = vpop.f32.mrb[6].mxu0 }
 0x1cf   : > { %v799_v32 = vcombine.low %v771_v24, %v778_v25  ;;  %v3413_v33 = vcombine.high %v771_v24, %v778_v25  ;;  %v815_v34 = vcombine.low %v787_v26, %v794_v27  ;;  %v3414_v35 = vcombine.high %v787_v26, %v794_v27  ;;  %v3556_v15 = vpop.f32.mrb[7].mxu0 }
 0x1d0   : > { %v989_v36 = vrot.slane %v981_v28, %v4275_v51  ;;  %v1005_v37 = vrot.slane %v997_v29, %v4275_v51  ;;  %v996_v45 = vrot.slane %v982_v30, %v4275_v51  ;;  %v1012_v46 = vrot.slane %v998_v31, %v4275_v51 }
 0x1d1   : > { %v806_v38 = vrot.slane %v799_v32, %v4273_v44  ;;  %v814_v39 = vrot.slane %v3413_v33, %v4273_v44  ;;  %v822_v40 = vrot.slane %v815_v34, %v4273_v44  ;;  %v830_v41 = vrot.slane %v3414_v35, %v4273_v44 }
 0x1d2   : > { %v1013_v42 = vcombine.low %v989_v36, %v1005_v37  ;;  %v1014_v43 = vcombine.high %v989_v36, %v1005_v37  ;;  %v1015_v56 = vcombine.low %v996_v45, %v1012_v46  ;;  %v1016_v57 = vcombine.high %v996_v45, %v1012_v46 }
 0x1d3   : > { %v831_v47 = vcombine.low %v806_v38, %v814_v39  ;;  %v847_v48 = vcombine.low %v822_v40, %v830_v41  ;;  %v832_v58 = vcombine.high %v806_v38, %v814_v39  ;;  %v848_v59 = vcombine.high %v822_v40, %v830_v41  ;;  %v3411_v41 = vld [vmem:[%s4756_s5 + $0x2] ss:$0 sm:$0xff] }
 0x1d4   : > { %v1017_v49 = vpack.c.bf16 %v1013_v42, %v1013_v42  ;;  %v1018_v50 = vpack.c.bf16 %v1014_v43, %v1014_v43  ;;  %v1019_v62 = vpack.c.bf16 %v1015_v56, %v1015_v56  ;;  %v1020_v63 = vpack.c.bf16 %v1016_v57, %v1016_v57 }
 0x1d5   : > { %v839_v52 = vrot.slane %v831_v47, %v4275_v51  ;;  %v855_v53 = vrot.slane %v847_v48, %v4275_v51  ;;  %v846_v3 = vrot.slane %v832_v58, %v4275_v51  ;;  %v862_v4 = vrot.slane %v848_v59, %v4275_v51 }
 0x1d6   : > { %v1176_v54 = vsel %vm1171_vm2, %v1017_v49, 0  ;;  %v1222_v55 = vsel %vm1171_vm2, %v1018_v50, 0  ;;  %v1268_v5 = vsel %vm1171_vm2, %v1019_v62, 0  ;;  %v1314_v6 = vsel %vm1171_vm2, %v1020_v63, 0 }
 0x1d7   : > { %3558 = vmatpush3.bf16.xpose.msra.mxu1 %v1176_v54  ;;  %3564 = vmatpush3.bf16.xpose.msra.mxu0 %v1222_v55  ;;  %v863_v60 = vcombine.low %v839_v52, %v855_v53  ;;  %v864_v61 = vcombine.high %v839_v52, %v855_v53  ;;  %v865_v7 = vcombine.low %v846_v3, %v862_v4  ;;  %vm1356_vm3 = vcmp.gt.f32.partialorder %v559_v16, 0.0 }
 0x1d8   : > { %3569 = vmatprep.subr.bf16.mxu1 %v3994_v0  ;;  %3575 = vmatprep.subr.bf16.mxu0 %v3994_v0  ;;  %v866_v8 = vcombine.high %v846_v3, %v862_v4  ;;  %v715_v42 = vadd.f32 %v3411_v41, %v714_v11 }
 0x1d9   : > { %v867_v1 = vpack.c.bf16 %v863_v60, %v863_v60  ;;  %v868_v2 = vpack.c.bf16 %v864_v61, %v864_v61  ;;  %v869_v9 = vpack.c.bf16 %v865_v7, %v865_v7 }
 0x1da   : > { %v870_v10 = vpack.c.bf16 %v866_v8, %v866_v8 }
 0x1de   : > { %3560 = vmatmul.mubr.msk.bf16.vlgmr.msra.gmra.mrb[4].mxu1 %vm1171_vm2, %v867_v1  ;;  %3566 = vmatmul.mubr.msk.bf16.vlgmr.msra.gmra.mrb[8].mxu0 %vm1171_vm2, %v868_v2 }
 0x1df   : > { %3570 = vmatpush3.bf16.xpose.msra.mxu1 %v1268_v5  ;;  %3576 = vmatpush3.bf16.xpose.msra.mxu0 %v1314_v6 }
 0x1e0   : > { %3571 = vmatprep.mubr.msk.bf16.mxu1 %vm3995_vm0, %v3994_v0  ;;  %3577 = vmatprep.mubr.msk.bf16.mxu0 %vm3995_vm0, %v3994_v0 }
 0x1e1   : > { %3581 = vmatprep.subr.bf16.mxu1 %v3994_v0  ;;  %3587 = vmatprep.subr.bf16.mxu0 %v3994_v0 }
 0x1e6   : > { %3572 = vmatmul.mubr.msk.bf16.vlgmr.msra.gmra.mrb[8].mxu1 %vm1171_vm2, %v869_v9  ;;  %3578 = vmatmul.mubr.msk.bf16.vlgmr.msra.gmra.mrb[12].mxu0 %vm1171_vm2, %v870_v10 }
 0x1e7   : > { %3583 = vmatprep.mubr.msk.bf16.mxu1 %vm3995_vm0, %v3994_v0  ;;  %3589 = vmatprep.mubr.msk.bf16.mxu0 %vm3995_vm0, %v3994_v0 }
 0x2b1   : > { %v1212_v17 = vpop.f32.mrb[4].mxu1  ;;  %v1258_v18 = vpop.f32.mrb[8].mxu0 }
 0x2b2   : > { %v1359_v19 = vsel %vm1356_vm3, %v1212_v17, -1e+09  ;;  %v1360_v20 = vsel %vm1356_vm3, %v1258_v18, -1e+09  ;;  %v3561_v21 = vpop.f32.mrb[5].mxu1  ;;  %v3567_v22 = vpop.f32.mrb[9].mxu0 }
 0x2b3   : > { %v1215_v23 = vpop.f32.mrb[6].mxu1  ;;  %v1261_v24 = vpop.f32.mrb[10].mxu0  ;;  %v1363_v25 = vsel %vm1171_vm2, %v1359_v19, -inf  ;;  %v1366_v26 = vsel %vm1171_vm2, %v1360_v20, -inf }
 0x2b4   : > { %1364 = vmax.xlane.f32.xlu0 %v1363_v25  ;;  %v3562_v27 = vpop.f32.mrb[7].mxu1  ;;  %1367 = vmax.xlane.f32.xlu1 %v1366_v26  ;;  %v3568_v28 = vpop.f32.mrb[11].mxu0 }
 0x2b9   : > { %v1304_v29 = vpop.f32.mrb[8].mxu1  ;;  %v1350_v30 = vpop.f32.mrb[12].mxu0 }
 0x2ba   : > { %v1361_v31 = vsel %vm1356_vm3, %v1304_v29, -1e+09  ;;  %v3573_v32 = vpop.f32.mrb[9].mxu1  ;;  %v3579_v33 = vpop.f32.mrb[13].mxu0  ;;  %v1362_v37 = vsel %vm1356_vm3, %v1350_v30, -1e+09 }
 0x2bb   : > { %v1307_v34 = vpop.f32.mrb[10].mxu1  ;;  %v1353_v35 = vpop.f32.mrb[14].mxu0  ;;  %v1369_v36 = vsel %vm1171_vm2, %v1361_v31, -inf  ;;  %v1372_v40 = vsel %vm1171_vm2, %v1362_v37, -inf }
 0x2bc   : > { %1370 = vmax.xlane.f32.xlu0 %v1369_v36  ;;  %v3574_v38 = vpop.f32.mrb[11].mxu1  ;;  %v3580_v39 = vpop.f32.mrb[15].mxu0 }
 0x2c0   : > { %1373 = vmax.xlane.f32.xlu0 %v1372_v40 }
 0x2c5   : > { %1022 = vrot.lane.b32.xlu1 %v715_v42, %s3997_s26 }
 0x341   : > { %v1365_v43 = vpop.xlane.xlu0 %1364  ;;  %v1368_v45 = vpop.xlane.xlu1 %1367 }
 0x342   : > { %v1375_v46 = vsub.f32 %v1359_v19, %v1365_v43  ;;  %v1376_v47 = vsub.f32 %v1360_v20, %v1368_v45 }
 0x344   : > { %v1379_v48 = vmul.f32 1.442695, %v1375_v46  ;;  %v1381_v49 = vmul.f32 1.442695, %v1376_v47 }
 0x345   : > { %v1023_v2 = vpop.permute.xlu1 %1022 }
 0x346   : > { %3795 = vpow2.f32 %v1379_v48 }
 0x347   : > { %3797 = vpow2.f32 %v1381_v49 }
 0x349   : > { %v1371_v55 = vpop.xlane.xlu0 %1370 }
 0x34a   : > { %v1377_v57 = vsub.f32 %v1361_v31, %v1371_v55 }
 0x34c   : > { %v1383_v59 = vmul.f32 1.442695, %v1377_v57 }
 0x34d   : > { %v1374_v56 = vpop.xlane.xlu0 %1373 }
 0x34e   : > { %v1378_v58 = vsub.f32 %v1362_v37, %v1374_v56  ;;  %3799 = vpow2.f32 %v1383_v59 }
 0x350   : > { %v4345_v50 = vpop.eup %3795  ;;  %v1385_v60 = vmul.f32 1.442695, %v1378_v58 }
 0x351   : > { %v4347_v52 = vpop.eup %3797  ;;  %v1387_v53 = vsel %vm1171_vm2, %v4345_v50, 0.0 }
 0x352   : > { %1388 = vadd.xlane.f32.xlu1 %v1387_v53  ;;  %v1390_v54 = vsel %vm1171_vm2, %v4347_v52, 0.0  ;;  %3801 = vpow2.f32 %v1385_v60 }
 0x353   : > { %1391 = vadd.xlane.f32.xlu0 %v1390_v54 }
 0x358   : > { %v4355_v61 = vpop.eup %3799 }
 0x359   : > { %v1393_v63 = vsel %vm1171_vm2, %v4355_v61, 0.0 }
 0x35c   : > { %v4357_v62 = vpop.eup %3801 }
 0x35d   : > { %v1396_v1 = vsel %vm1171_vm2, %v4357_v62, 0.0 }
 0x363   : > { %1028 = vrot.lane.b32.xlu1 %v715_v42, %s3996_s24 }
 0x369   : > { %1025 = vrot.lane.b32.xlu0 %v715_v42, %s3998_s18 }
 0x387   : > { %1394 = vadd.xlane.f32.xlu1 %v1393_v63 }
 0x388   : > { %1397 = vadd.xlane.f32.xlu0 %v1396_v1 }
 0x3df   : > { %v1389_v3 = vpop.xlane.xlu1 %1388 }
 0x3e0   : > { %v1392_v4 = vpop.xlane.xlu0 %1391  ;;  %3803 = vrcp.f32 %v1389_v3 }
 0x3e1   : > { %3805 = vrcp.f32 %v1392_v4 }
 0x3e3   : > { %v1029_v5 = vpop.permute.xlu1 %1028 }
 0x3e4   : > { %v1047_v6 = vcombine.low %v1023_v2, %v1029_v5  ;;  %v1048_v7 = vcombine.high %v1023_v2, %v1029_v5  ;;  %v1026_v8 = vpop.permute.xlu0 %1025 }
 0x3e5   : > { %v1031_v9 = vcombine.low %v715_v42, %v1026_v8  ;;  %v1032_v10 = vcombine.high %v715_v42, %v1026_v8 }
 0x3e6   : > { %v1055_v11 = vrot.slane %v1047_v6, %v4273_v44  ;;  %v1062_v13 = vrot.slane %v1048_v7, %v4273_v44 }
 0x3e7   : > { %v1039_v14 = vrot.slane %v1031_v9, %v4273_v44  ;;  %v1046_v15 = vrot.slane %v1032_v10, %v4273_v44 }
 0x3e9   : > { %v1063_v16 = vcombine.low %v1039_v14, %v1055_v11  ;;  %v1064_v17 = vcombine.high %v1039_v14, %v1055_v11  ;;  %v1079_v18 = vcombine.low %v1046_v15, %v1062_v13  ;;  %v1080_v19 = vcombine.high %v1046_v15, %v1062_v13 }
 0x3ea   : > { %v3804_v38 = vpop.eup %3803 }
 0x3eb   : > { %v1071_v20 = vrot.slane %v1063_v16, %v4275_v51  ;;  %v1078_v21 = vrot.slane %v1064_v17, %v4275_v51  ;;  %v1087_v22 = vrot.slane %v1079_v18, %v4275_v51  ;;  %v1094_v23 = vrot.slane %v1080_v19, %v4275_v51  ;;  %v3806_v41 = vpop.eup %3805 }
 0x3ec   : > { %v1403_v47 = vmul.f32 %v3804_v38, %v4345_v50  ;;  %v1404_v48 = vmul.f32 %v3806_v41, %v4347_v52  ;;  %v1753_v41 = vld [vmem:[#allocation2 + $0x70] sm:$0xff] }
 0x3ed   : > { %v1099_v24 = vcombine.low %v1071_v20, %v1078_v21  ;;  %v3417_v25 = vcombine.high %v1071_v20, %v1078_v21  ;;  %v1115_v26 = vcombine.low %v1087_v22, %v1094_v23  ;;  %v3418_v27 = vcombine.high %v1087_v22, %v1094_v23 }
 0x3ee   : > { %v1407_v58 = vpack.c.bf16 %v1403_v47, %v1403_v47  ;;  %v1408_v59 = vpack.c.bf16 %v1404_v48, %v1404_v48 }
 0x3ef   : > { %v1106_v28 = vrot.slane %v1099_v24, %v4273_v44  ;;  %v1114_v29 = vrot.slane %v3417_v25, %v4273_v44  ;;  %v1122_v30 = vrot.slane %v1115_v26, %v4273_v44  ;;  %v1130_v31 = vrot.slane %v3418_v27, %v4273_v44 }
 0x3f1   : > { %v1131_v32 = vcombine.low %v1106_v28, %v1114_v29  ;;  %v1132_v33 = vcombine.high %v1106_v28, %v1114_v29  ;;  %v1147_v34 = vcombine.low %v1122_v30, %v1130_v31  ;;  %v1148_v35 = vcombine.high %v1122_v30, %v1130_v31  ;;  %v1751_v30 = vld [vmem:[#allocation2 + $0x60] sm:$0xff]  ;;  %v1752_v31 = vld [vmem:[#allocation2 + $0x68] sm:$0xff] }
 0x3f3   : > { %v1139_v36 = vrot.slane %v1131_v32, %v4275_v51  ;;  %v1146_v37 = vrot.slane %v1132_v33, %v4275_v51  ;;  %v1155_v39 = vrot.slane %v1147_v34, %v4275_v51  ;;  %v1162_v40 = vrot.slane %v1148_v35, %v4275_v51 }
 0x3f5   : > { %v1163_v42 = vcombine.low %v1139_v36, %v1155_v39  ;;  %v1164_v43 = vcombine.high %v1139_v36, %v1155_v39  ;;  %v1165_v45 = vcombine.low %v1146_v37, %v1162_v40  ;;  %v1166_v46 = vcombine.high %v1146_v37, %v1162_v40 }
 0x3f6   : > { %v1755_v36 = vpack.c.bf16 %v1752_v31, %v1751_v30  ;;  %v1835_v31 = vld [vmem:[#allocation5] sm:$0xff] }
 0x3f7   : > { %v1167_v49 = vpack.c.bf16 %v1163_v42, %v1163_v42  ;;  %v1168_v53 = vpack.c.bf16 %v1164_v43, %v1164_v43  ;;  %v1169_v56 = vpack.c.bf16 %v1165_v45, %v1165_v45  ;;  %v1170_v57 = vpack.c.bf16 %v1166_v46, %v1166_v46  ;;  %v1754_v42 = vld [vmem:[#allocation2 + $0x78] sm:$0xff] }
 0x3f8   : > { %v1756_v48 = vpack.c.bf16 %v1754_v42, %v1753_v41 }
 0x3f9   : > { %v1416_v54 = vsel %vm1414_vm4, %v1167_v49, 0  ;;  %v1462_v55 = vsel %vm1414_vm4, %v1168_v53, 0  ;;  %v1508_v50 = vsel %vm1414_vm4, %v1169_v56, 0  ;;  %v1554_v52 = vsel %vm1414_vm4, %v1170_v57, 0 }
 0x3fa   : > { %3582 = vmatpush3.bf16.msra.mxu1 %v1416_v54  ;;  %3588 = vmatpush3.bf16.msra.mxu0 %v1462_v55 }
 0x3fb   : > { %3593 = vmatprep.subr.bf16.mxu1 %v3994_v0  ;;  %3599 = vmatprep.subr.bf16.mxu0 %v3994_v0 }
 0x3fd   : > { %3584 = vmatmul.mubr.msk.bf16.vlgmr.msra.gmra.mrb[12].mxu1 %vm1171_vm2, %v1407_v58  ;;  %3590 = vmatmul.mubr.msk.bf16.vlgmr.msra.gmra.mrb[16].mxu0 %vm1171_vm2, %v1408_v59 }
 0x3fe   : > { %3594 = vmatpush3.bf16.msra.mxu1 %v1508_v50  ;;  %3600 = vmatpush3.bf16.msra.mxu0 %v1554_v52 }
 0x3ff   : > { %3595 = vmatprep.mubr.msk.bf16.mxu1 %vm3995_vm0, %v3994_v0  ;;  %3601 = vmatprep.mubr.msk.bf16.mxu0 %vm3995_vm0, %v3994_v0 }
 0x400   : > { %3605 = vmatprep.subr.bf16.mxu1 %v3994_v0  ;;  %3613 = vmatprep.subr.bf16.mxu0 %v3994_v0 }
 0x414   : > { %v1395_v60 = vpop.xlane.xlu1 %1394 }
 0x415   : > { %3807 = vrcp.f32 %v1395_v60  ;;  %v1398_v63 = vpop.xlane.xlu0 %1397 }
 0x416   : > { %3809 = vrcp.f32 %v1398_v63 }
 0x41f   : > { %v3808_v1 = vpop.eup %3807 }
 0x420   : > { %v3810_v2 = vpop.eup %3809  ;;  %v1405_v3 = vmul.f32 %v3808_v1, %v4355_v61 }
 0x421   : > { %v1406_v4 = vmul.f32 %v3810_v2, %v4357_v62 }
 0x422   : > { %v1409_v5 = vpack.c.bf16 %v1405_v3, %v1405_v3 }
 0x423   : > { %v1410_v6 = vpack.c.bf16 %v1406_v4, %v1406_v4 }
 0x424   : > { %3596 = vmatmul.mubr.msk.bf16.vlgmr.msra.gmra.mrb[16].mxu1 %vm1171_vm2, %v1409_v5 }
 0x425   : > { %3602 = vmatmul.mubr.msk.bf16.vlgmr.msra.gmra.mrb[20].mxu0 %vm1171_vm2, %v1410_v6  ;;  %3609 = vmatprep.mubr.msk.bf16.mxu1 %vm3995_vm0, %v3994_v0 }
 0x426   : > { %3617 = vmatprep.mubr.msk.bf16.mxu0 %vm3995_vm0, %v3994_v0  ;;  %3606 = vmatpush3.bf16.msra.mxu1 %v1755_v36 }
 0x427   : > { %3607 = vmatprep.subr.bf16.mxu1 %v3994_v0 }
 0x42a   : > { %3608 = vmatpush3.bf16.msra.mxu1 %v1756_v48  ;;  %v3431_v48 = vld [vmem:[%s4759_s8] ss:$0 sm:$0xff] }
 0x42b   : > { %3621 = vmatprep.subr.bf16.mxu1 %v3994_v0 }
 0x4d0   : > { %v1452_v7 = vpop.f32.mrb[12].mxu1  ;;  %v1498_v8 = vpop.f32.mrb[16].mxu0 }
 0x4d1   : > { %v3585_v9 = vpop.f32.mrb[13].mxu1  ;;  %v3591_v10 = vpop.f32.mrb[17].mxu0 }
 0x4d2   : > { %v1455_v11 = vpop.f32.mrb[14].mxu1  ;;  %v1501_v61 = vpop.f32.mrb[18].mxu0 }
 0x4d3   : > { %v3586_v13 = vpop.f32.mrb[15].mxu1  ;;  %v3592_v62 = vpop.f32.mrb[19].mxu0  ;;  %v3429_v61 = vld [vmem:[%s4756_s5 + $0x3] ss:$0 sm:$0xff] }
 0x4f7   : > { %v1544_v14 = vpop.f32.mrb[16].mxu1 }
 0x4f8   : > { %v1596_v15 = vcombine.low %v1452_v7, %v1544_v14  ;;  %v1597_v16 = vcombine.high %v1452_v7, %v1544_v14  ;;  %v1590_v17 = vpop.f32.mrb[20].mxu0  ;;  %v3597_v18 = vpop.f32.mrb[17].mxu1 }
 0x4f9   : > { %v1612_v19 = vcombine.low %v1498_v8, %v1590_v17  ;;  %v1613_v20 = vcombine.high %v1498_v8, %v1590_v17  ;;  %v3603_v21 = vpop.f32.mrb[21].mxu0  ;;  %v1547_v22 = vpop.f32.mrb[18].mxu1 }
 0x4fa   : > { %v1604_v23 = vrot.slane %v1596_v15, %v4273_v44  ;;  %v1611_v24 = vrot.slane %v1597_v16, %v4273_v44  ;;  %v1593_v25 = vpop.f32.mrb[22].mxu0  ;;  %v3598_v26 = vpop.f32.mrb[19].mxu1  ;;  %v1892_v21 = vld [vmem:[#allocation5 + $0x30] sm:$0xff] }
 0x4fb   : > { %v1620_v27 = vrot.slane %v1612_v19, %v4273_v44  ;;  %v1627_v28 = vrot.slane %v1613_v20, %v4273_v44  ;;  %v3604_v29 = vpop.f32.mrb[23].mxu0  ;;  %v1890_v19 = vld [vmem:[#allocation5 + $0x20] sm:$0xff]  ;;  %v1891_v20 = vld [vmem:[#allocation5 + $0x28] sm:$0xff] }
 0x4fc   : > { %v1894_v22 = vpack.c.bf16 %v1891_v20, %v1890_v19  ;;  %v558_v25 = vld [vmem:[%s547_s23] sm:$0xff]  ;;  %s4800_s23 = sld [smem:[#allocation13_spill]] }
 0x4fd   : > { %v1628_v32 = vcombine.low %v1604_v23, %v1620_v27  ;;  %v1629_v33 = vcombine.high %v1604_v23, %v1620_v27  ;;  %v1644_v34 = vcombine.low %v1611_v24, %v1627_v28  ;;  %v1645_v35 = vcombine.high %v1611_v24, %v1627_v28  ;;  %v1893_v23 = vld [vmem:[#allocation5 + $0x38] sm:$0xff] }
 0x4fe   : > { %v1895_v24 = vpack.c.bf16 %v1893_v23, %v1892_v21  ;;  %v4440_v26 = vpack.c.bf16 %v558_v25, %v558_v25  ;;  %v1947_v23 = vld [vmem:[#allocation5 + $0x50] sm:$0xff] }
 0x4ff   : > { %v1636_v37 = vrot.slane %v1628_v32, %v4275_v51  ;;  %v1643_v38 = vrot.slane %v1629_v33, %v4275_v51  ;;  %v1652_v39 = vrot.slane %v1644_v34, %v4275_v51  ;;  %v1659_v40 = vrot.slane %v1645_v35, %v4275_v51  ;;  %v1836_v32 = vld [vmem:[#allocation5 + $0x8] sm:$0xff]  ;;  %v1837_v34 = vld [vmem:[#allocation5 + $0x10] sm:$0xff]  ;;  %v1838_v35 = vld [vmem:[#allocation5 + $0x18] sm:$0xff] }
 0x500   : > { %v1839_v33 = vpack.c.bf16 %v1836_v32, %v1835_v31  ;;  %v1840_v36 = vpack.c.bf16 %v1838_v35, %v1837_v34 }
 0x501   : > { %v1664_v43 = vcombine.low %v1636_v37, %v1643_v38  ;;  %v3427_v45 = vcombine.high %v1636_v37, %v1643_v38  ;;  %v1680_v46 = vcombine.low %v1652_v39, %v1659_v40  ;;  %v3428_v47 = vcombine.high %v1652_v39, %v1659_v40  ;;  %v3435_v37 = vld [vmem:[%s4758_s7 + $0x1] ss:$0 sm:$0xff] }
 0x502   : > { %3614 = vmatpush3.bf16.msra.mxu0 %v1839_v33 }
 0x503   : > { %v1671_v49 = vrot.slane %v1664_v43, %v4273_v44  ;;  %v1679_v53 = vrot.slane %v3427_v45, %v4273_v44  ;;  %v1687_v54 = vrot.slane %v1680_v46, %v4273_v44  ;;  %v1695_v55 = vrot.slane %v3428_v47, %v4273_v44  ;;  %3615 = vmatprep.subr.bf16.mxu0 %v3994_v0 }
 0x505   : > { %v1697_v56 = vcombine.high %v1671_v49, %v1679_v53  ;;  %v1713_v57 = vcombine.high %v1687_v54, %v1695_v55  ;;  %v1696_v58 = vcombine.low %v1671_v49, %v1679_v53  ;;  %v1712_v59 = vcombine.low %v1687_v54, %v1695_v55  ;;  %v3432_v53 = vld [vmem:[#allocation7] ss:$0 sm:$0xff] }
 0x506   : > { %3616 = vmatpush3.bf16.msra.mxu0 %v1840_v36 }
 0x507   : > { %v1711_v50 = vrot.slane %v1697_v56, %v4275_v51  ;;  %v1727_v52 = vrot.slane %v1713_v57, %v4275_v51  ;;  %v1704_v60 = vrot.slane %v1696_v58, %v4275_v51  ;;  %v1720_v63 = vrot.slane %v1712_v59, %v4275_v51  ;;  %3629 = vmatprep.subr.bf16.mxu0 %v3994_v0 }
 0x509   : > { %v1730_v1 = vcombine.low %v1711_v50, %v1727_v52  ;;  %v1729_v2 = vcombine.high %v1704_v60, %v1720_v63  ;;  %v1731_v3 = vcombine.high %v1711_v50, %v1727_v52  ;;  %v1728_v4 = vcombine.low %v1704_v60, %v1720_v63 }
 0x50b   : > { %1737 = vrot.lane.b32.xlu1 %v1730_v1, %s4001_s16  ;;  %1733 = vrot.lane.b32.xlu0 %v1729_v2, %s4002_s25 }
 0x50f   : > { %1741 = vrot.lane.b32.xlu1 %v1731_v3, %s4003_s28 }
 0x57d   : > { %v1738_v5 = vpop.permute.xlu1 %1737  ;;  %v1734_v6 = vpop.permute.xlu0 %1733 }
 0x57e   : > { %v1744_v7 = vsel %vm1171_vm2, %v1728_v4, %v1734_v6 }
 0x57f   : > { %v1746_v9 = vsel %vm1745_vm5, %v1744_v7, %v1738_v5 }
 0x581   : > { %v1742_v8 = vpop.permute.xlu1 %1741 }
 0x582   : > { %v1748_v10 = vsel %vm1747_vm6, %v1746_v9, %v1742_v8 }
 0x583   : > { %v1749_v11 = vpack.c.bf16 %v1748_v10, %v1748_v10 }
 0x585   : > { %3610 = vmatmul.mubr.msk.bf16.vlgmr.msra.gmra.mrb[20].mxu1 %vm572_vm1, %v1749_v11 }
 0x586   : > { %3625 = vmatprep.mubr.msk.bf16.mxu1 %vm3995_vm0, %v3994_v0  ;;  %3622 = vmatpush3.bf16.msra.mxu1 %v1894_v22 }
 0x587   : > { %3623 = vmatprep.subr.bf16.mxu1 %v3994_v0 }
 0x58a   : > { %3624 = vmatpush3.bf16.msra.mxu1 %v1895_v24  ;;  %v1948_v24 = vld [vmem:[#allocation5 + $0x58] sm:$0xff] }
 0x58b   : > { %3637 = vmatprep.subr.bf16.mxu1 %v3994_v0  ;;  %v1950_v25 = vpack.c.bf16 %v1948_v24, %v1947_v23 }
 0x58d   : > { %3626 = vmatmul.mubr.msk.bf16.vlgmr.msra.gmra.mrb[24].mxu1 %vm572_vm1, %v4440_v26 }
 0x58e   : > { %3639 = vmatprep.mubr.msk.bf16.mxu1 %vm3995_vm0, %v3994_v0 }
 0x658   : > { %v1799_v13 = vpop.f32.mrb[20].mxu1 }
 0x659   : > { %v1800_v62 = vadd.f32 %v3429_v61, %v1799_v13  ;;  %v3611_v14 = vpop.f32.mrb[21].mxu1 }
 0x65a   : > { %v1802_v15 = vpop.f32.mrb[22].mxu1 }
 0x65b   : > { %v3612_v16 = vpop.f32.mrb[23].mxu1  ;;  %v1805_v17 = vadd.f32 %v1800_v62, %v4242_v12 }
 0x65c   : > { %v1945_v16 = vld [vmem:[#allocation5 + $0x40] sm:$0xff] }
 0x65d   : > { %v1808_v18 = vsel %vm572_vm1, %v1805_v17, 0.0 }
 0x65e   : > { %1809 = vadd.xlane.f32.xlu0 %v1808_v18 }
 0x660   : > { %v1938_v38 = vpop.f32.mrb[24].mxu1 }
 0x661   : > { %v1939_v39 = vadd.f32 %v3435_v37, %v1938_v38  ;;  %v3627_v40 = vpop.f32.mrb[25].mxu1 }
 0x662   : > { %v1941_v41 = vpop.f32.mrb[26].mxu1 }
 0x663   : > { %v3628_v42 = vpop.f32.mrb[27].mxu1 }
 0x674   : > { %2148 = vrot.lane.b32.xlu0 %v1939_v39, %s3997_s26 }
 0x678   : > { %2154 = vrot.lane.b32.xlu0 %v1939_v39, %s3996_s24 }
 0x6eb   : > { %v1810_v12 = vpop.xlane.xlu0 %1809 }
 0x6ec   : > { %v1812_v27 = vmul.f32 0.03125, %v1810_v12 }
 0x6ee   : > { %v1813_v28 = vsub.f32 %v1805_v17, %v1812_v27  ;;  %v1946_v17 = vld [vmem:[#allocation5 + $0x48] sm:$0xff] }
 0x6ef   : > { %v2149_v57 = vpop.permute.xlu0 %2148  ;;  %v1949_v18 = vpack.c.bf16 %v1946_v17, %v1945_v16 }
 0x6f0   : > { %v1814_v29 = vmul.f32 %v1813_v28, %v1813_v28 }
 0x6f2   : > { %v1815_v30 = vsel %vm572_vm1, %v1814_v29, 0.0 }
 0x6f3   : > { %1816 = vadd.xlane.f32.xlu1 %v1815_v30  ;;  %v2155_v59 = vpop.permute.xlu0 %2154 }
 0x6f4   : > { %v2173_v60 = vcombine.low %v2149_v57, %v2155_v59  ;;  %v2174_v63 = vcombine.high %v2149_v57, %v2155_v59 }
 0x6f6   : > { %v2181_v3 = vrot.slane %v2173_v60, %v4273_v44  ;;  %v2188_v4 = vrot.slane %v2174_v63, %v4273_v44 }
 0x704   : > { %2151 = vrot.lane.b32.xlu1 %v1939_v39, %s3998_s18 }
 0x780   : > { %v1817_v43 = vpop.xlane.xlu1 %1816 }
 0x781   : > { %v1818_v45 = vmul.f32 0.03125, %v1817_v43 }
 0x783   : > { %v1819_v46 = vadd.f32 1e-05, %v1818_v45 }
 0x784   : > { %v2152_v58 = vpop.permute.xlu1 %2151 }
 0x785   : > { %3811 = vrsqrt.f32 %v1819_v46  ;;  %v2157_v50 = vcombine.low %v1939_v39, %v2152_v58  ;;  %v2158_v52 = vcombine.high %v1939_v39, %v2152_v58 }
 0x787   : > { %v2165_v1 = vrot.slane %v2157_v50, %v4273_v44  ;;  %v2172_v2 = vrot.slane %v2158_v52, %v4273_v44 }
 0x789   : > { %v2189_v5 = vcombine.low %v2165_v1, %v2181_v3  ;;  %v2190_v6 = vcombine.high %v2165_v1, %v2181_v3  ;;  %v2205_v7 = vcombine.low %v2172_v2, %v2188_v4  ;;  %v2206_v8 = vcombine.high %v2172_v2, %v2188_v4 }
 0x78b   : > { %v2197_v9 = vrot.slane %v2189_v5, %v4275_v51  ;;  %v2204_v10 = vrot.slane %v2190_v6, %v4275_v51  ;;  %v2213_v11 = vrot.slane %v2205_v7, %v4275_v51  ;;  %v2220_v61 = vrot.slane %v2206_v8, %v4275_v51 }
 0x78d   : > { %v2225_v13 = vcombine.low %v2197_v9, %v2204_v10  ;;  %v3441_v62 = vcombine.high %v2197_v9, %v2204_v10  ;;  %v2241_v14 = vcombine.low %v2213_v11, %v2220_v61  ;;  %v3442_v15 = vcombine.high %v2213_v11, %v2220_v61 }
 0x78f   : > { %v3812_v47 = vpop.eup %3811  ;;  %v2232_v19 = vrot.slane %v2225_v13, %v4273_v44  ;;  %v2240_v20 = vrot.slane %v3441_v62, %v4273_v44  ;;  %v2248_v21 = vrot.slane %v2241_v14, %v4273_v44  ;;  %v2256_v22 = vrot.slane %v3442_v15, %v4273_v44 }
 0x790   : > { %v1821_v49 = vmul.f32 %v3812_v47, %v1813_v28 }
 0x791   : > { %v2257_v12 = vcombine.low %v2232_v19, %v2240_v20  ;;  %v2273_v27 = vcombine.low %v2248_v21, %v2256_v22  ;;  %v2258_v28 = vcombine.high %v2232_v19, %v2240_v20  ;;  %v2274_v29 = vcombine.high %v2248_v21, %v2256_v22 }
 0x792   : > { %v1826_v54 = vmul.f32 %v3431_v48, %v1821_v49 }
 0x793   : > { %v2265_v30 = vrot.slane %v2257_v12, %v4275_v51  ;;  %v2281_v31 = vrot.slane %v2273_v27, %v4275_v51  ;;  %v2272_v32 = vrot.slane %v2258_v28, %v4275_v51  ;;  %v2288_v33 = vrot.slane %v2274_v29, %v4275_v51 }
 0x794   : > { %v4459_v55 = vadd.f32 %v3432_v53, %v1826_v54 }
 0x795   : > { %v2289_v34 = vcombine.low %v2265_v30, %v2281_v31  ;;  %v2290_v35 = vcombine.high %v2265_v30, %v2281_v31  ;;  %v4488_v36 = vcombine.low %v2272_v32, %v2288_v33  ;;  %v4490_v37 = vcombine.high %v2272_v32, %v2288_v33 }
 0x796   : > { %v1833_v56 = vpack.c.bf16 %v4459_v55, %v4459_v55 }
 0x797   : > { %v2293_v38 = vpack.c.bf16 %v2289_v34, %v2289_v34  ;;  %v2294_v39 = vpack.c.bf16 %v2290_v35, %v2290_v35  ;;  %v2295_v28 = vpack.c.bf16 %v4488_v36, %v4488_v36  ;;  %v2296_v29 = vpack.c.bf16 %v4490_v37, %v4490_v37 }
 0x798   : > { %3618 = vmatmul.mubr.msk.bf16.vlgmr.msra.gmra.mrb[24].mxu0 %vm572_vm1, %v1833_v56 }
 0x799   : > { %3633 = vmatprep.mubr.msk.bf16.mxu0 %vm3995_vm0, %v3994_v0  ;;  %3630 = vmatpush3.bf16.msra.mxu0 %v1949_v18  ;;  %v2451_v40 = vsel %vm1171_vm2, %v2293_v38, 0  ;;  %v2497_v41 = vsel %vm1171_vm2, %v2294_v39, 0  ;;  %v2543_v34 = vsel %vm1171_vm2, %v2295_v28, 0  ;;  %v2589_v35 = vsel %vm1171_vm2, %v2296_v29, 0 }
 0x79a   : > { %3631 = vmatprep.subr.bf16.mxu0 %v3994_v0  ;;  %3638 = vmatpush3.bf16.xpose.msra.mxu1 %v2451_v40  ;;  %v1832_v40 = vld [vmem:[%s555_s30] sm:$0xff] }
 0x79b   : > { %3649 = vmatprep.subr.bf16.mxu1 %v3994_v0  ;;  %vm2631_vm7 = vcmp.gt.f32.partialorder %v1832_v40, 0.0 }
 0x79d   : > { %3632 = vmatpush3.bf16.msra.mxu0 %v1950_v25 }
 0x79e   : > { %3643 = vmatprep.subr.bf16.mxu0 %v3994_v0 }
 0x7a0   : > { %3634 = vmatmul.mubr.msk.bf16.vlgmr.msra.gmra.mrb[28].mxu0 %vm572_vm1, %v4440_v26  ;;  %v3433_v26 = vld [vmem:[%s4758_s7] ss:$0 sm:$0xff] }
 0x7a1   : > { %3645 = vmatprep.mubr.msk.bf16.mxu0 %vm3995_vm0, %v3994_v0 }
 0x7a6   : > { %3644 = vmatpush3.bf16.xpose.msra.mxu0 %v2497_v41 }
 0x7a7   : > { %3655 = vmatprep.subr.bf16.mxu0 %v3994_v0 }
 0x86b   : > { %v1883_v42 = vpop.f32.mrb[24].mxu0 }
 0x86c   : > { %v1884_v43 = vadd.f32 %v3433_v26, %v1883_v42  ;;  %v3619_v45 = vpop.f32.mrb[25].mxu0 }
 0x86d   : > { %v1886_v46 = vpop.f32.mrb[26].mxu0 }
 0x86e   : > { %v1996_v47 = vmul.f32 0.35355338, %v1884_v43  ;;  %v3620_v48 = vpop.f32.mrb[27].mxu0 }
 0x870   : > { %2001 = vrot.lane.b32.xlu0 %v1996_v47, %s3998_s18  ;;  %1998 = vrot.lane.b32.xlu1 %v1996_v47, %s3997_s26 }
 0x873   : > { %v4502_v49 = vpop.f32.mrb[28].mxu0 }
 0x874   : > { %2004 = vrot.lane.b32.xlu1 %v1996_v47, %s3996_s24  ;;  %v3635_v53 = vpop.f32.mrb[29].mxu0 }
 0x875   : > { %v1993_v54 = vpop.f32.mrb[30].mxu0 }
 0x876   : > { %v3636_v56 = vpop.f32.mrb[31].mxu0 }
 0x8e2   : > { %v2002_v57 = vpop.permute.xlu0 %2001  ;;  %v1999_v58 = vpop.permute.xlu1 %1998 }
 0x8e3   : > { %v2007_v59 = vcombine.low %v1996_v47, %v2002_v57  ;;  %v2008_v50 = vcombine.high %v1996_v47, %v2002_v57 }
 0x8e5   : > { %v2015_v1 = vrot.slane %v2007_v59, %v4273_v44  ;;  %v2022_v2 = vrot.slane %v2008_v50, %v4273_v44 }
 0x8e6   : > { %v2005_v52 = vpop.permute.xlu1 %2004 }
 0x8e7   : > { %v2023_v60 = vcombine.low %v1999_v58, %v2005_v52  ;;  %v2024_v63 = vcombine.high %v1999_v58, %v2005_v52 }
 0x8e9   : > { %v2031_v3 = vrot.slane %v2023_v60, %v4273_v44  ;;  %v2038_v4 = vrot.slane %v2024_v63, %v4273_v44 }
 0x8eb   : > { %v2039_v5 = vcombine.low %v2015_v1, %v2031_v3  ;;  %v2040_v6 = vcombine.high %v2015_v1, %v2031_v3  ;;  %v2055_v7 = vcombine.low %v2022_v2, %v2038_v4  ;;  %v2056_v8 = vcombine.high %v2022_v2, %v2038_v4 }
 0x8ed   : > { %v2047_v9 = vrot.slane %v2039_v5, %v4275_v51  ;;  %v2054_v10 = vrot.slane %v2040_v6, %v4275_v51  ;;  %v2063_v11 = vrot.slane %v2055_v7, %v4275_v51  ;;  %v2070_v61 = vrot.slane %v2056_v8, %v4275_v51  ;;  %v3437_v7 = vld [vmem:[%s4758_s7 + $0x2] ss:$0 sm:$0xff] }
 0x8ee   : > { %v1991_v8 = vadd.f32 %v3437_v7, %v4502_v49 }
 0x8ef   : > { %v2075_v13 = vcombine.low %v2047_v9, %v2054_v10  ;;  %v3439_v62 = vcombine.high %v2047_v9, %v2054_v10  ;;  %v2091_v14 = vcombine.low %v2063_v11, %v2070_v61  ;;  %v3440_v15 = vcombine.high %v2063_v11, %v2070_v61 }
 0x8f1   : > { %v2082_v16 = vrot.slane %v2075_v13, %v4273_v44  ;;  %v2090_v17 = vrot.slane %v3439_v62, %v4273_v44  ;;  %v2098_v18 = vrot.slane %v2091_v14, %v4273_v44  ;;  %v2106_v19 = vrot.slane %v3440_v15, %v4273_v44 }
 0x8f3   : > { %v2107_v20 = vcombine.low %v2082_v16, %v2090_v17  ;;  %v2123_v21 = vcombine.low %v2098_v18, %v2106_v19  ;;  %v2108_v22 = vcombine.high %v2082_v16, %v2090_v17  ;;  %v2124_v23 = vcombine.high %v2098_v18, %v2106_v19 }
 0x8f5   : > { %v2115_v24 = vrot.slane %v2107_v20, %v4275_v51  ;;  %v2131_v25 = vrot.slane %v2123_v21, %v4275_v51  ;;  %v2122_v32 = vrot.slane %v2108_v22, %v4275_v51  ;;  %v2138_v33 = vrot.slane %v2124_v23, %v4275_v51 }
 0x8f7   : > { %v2139_v12 = vcombine.low %v2115_v24, %v2131_v25  ;;  %v2140_v27 = vcombine.high %v2115_v24, %v2131_v25  ;;  %v2141_v36 = vcombine.low %v2122_v32, %v2138_v33  ;;  %v2142_v37 = vcombine.high %v2122_v32, %v2138_v33 }
 0x8f9   : > { %v2143_v30 = vpack.c.bf16 %v2139_v12, %v2139_v12  ;;  %v2144_v31 = vpack.c.bf16 %v2140_v27, %v2140_v27  ;;  %v2145_v38 = vpack.c.bf16 %v2141_v36, %v2141_v36  ;;  %v2146_v39 = vpack.c.bf16 %v2142_v37, %v2142_v37 }
 0x8fb   : > { %3640 = vmatmul.mubr.msk.bf16.vlgmr.msra.gmra.mrb[28].mxu1 %vm1171_vm2, %v2143_v30  ;;  %3646 = vmatmul.mubr.msk.bf16.vlgmr.msra.gmra.mrb[32].mxu0 %vm1171_vm2, %v2144_v31 }
 0x8fc   : > { %3650 = vmatpush3.bf16.xpose.msra.mxu1 %v2543_v34  ;;  %3656 = vmatpush3.bf16.xpose.msra.mxu0 %v2589_v35 }
 0x8fd   : > { %3651 = vmatprep.mubr.msk.bf16.mxu1 %vm3995_vm0, %v3994_v0  ;;  %3657 = vmatprep.mubr.msk.bf16.mxu0 %vm3995_vm0, %v3994_v0 }
 0x8fe   : > { %3661 = vmatprep.subr.bf16.mxu1 %v3994_v0  ;;  %3667 = vmatprep.subr.bf16.mxu0 %v3994_v0 }
 0x903   : > { %3652 = vmatmul.mubr.msk.bf16.vlgmr.msra.gmra.mrb[32].mxu1 %vm1171_vm2, %v2145_v38  ;;  %3658 = vmatmul.mubr.msk.bf16.vlgmr.msra.gmra.mrb[36].mxu0 %vm1171_vm2, %v2146_v39 }
 0x904   : > { %3663 = vmatprep.mubr.msk.bf16.mxu1 %vm3995_vm0, %v3994_v0  ;;  %3669 = vmatprep.mubr.msk.bf16.mxu0 %vm3995_vm0, %v3994_v0 }
 0x9ce   : > { %v2487_v41 = vpop.f32.mrb[28].mxu1  ;;  %v2533_v26 = vpop.f32.mrb[32].mxu0 }
 0x9cf   : > { %v2634_v42 = vsel %vm2631_vm7, %v2487_v41, -1e+09  ;;  %v2635_v43 = vsel %vm2631_vm7, %v2533_v26, -1e+09  ;;  %v3641_v45 = vpop.f32.mrb[29].mxu1  ;;  %v3647_v46 = vpop.f32.mrb[33].mxu0 }
 0x9d0   : > { %v2490_v47 = vpop.f32.mrb[30].mxu1  ;;  %v2536_v48 = vpop.f32.mrb[34].mxu0  ;;  %v2638_v53 = vsel %vm1171_vm2, %v2634_v42, -inf  ;;  %v2641_v54 = vsel %vm1171_vm2, %v2635_v43, -inf }
 0x9d1   : > { %2639 = vmax.xlane.f32.xlu0 %v2638_v53  ;;  %v3642_v56 = vpop.f32.mrb[31].mxu1  ;;  %2642 = vmax.xlane.f32.xlu1 %v2641_v54  ;;  %v3648_v57 = vpop.f32.mrb[35].mxu0 }
 0x9d6   : > { %v2579_v58 = vpop.f32.mrb[32].mxu1  ;;  %v2625_v59 = vpop.f32.mrb[36].mxu0 }
 0x9d7   : > { %v2636_v50 = vsel %vm2631_vm7, %v2579_v58, -1e+09  ;;  %v3653_v52 = vpop.f32.mrb[33].mxu1  ;;  %v3659_v60 = vpop.f32.mrb[37].mxu0  ;;  %v2637_v3 = vsel %vm2631_vm7, %v2625_v59, -1e+09 }
 0x9d8   : > { %v2582_v63 = vpop.f32.mrb[34].mxu1  ;;  %v2628_v1 = vpop.f32.mrb[38].mxu0  ;;  %v2644_v2 = vsel %vm1171_vm2, %v2636_v50, -inf  ;;  %v2647_v6 = vsel %vm1171_vm2, %v2637_v3, -inf }
 0x9d9   : > { %2645 = vmax.xlane.f32.xlu0 %v2644_v2  ;;  %v3654_v4 = vpop.f32.mrb[35].mxu1  ;;  %v3660_v5 = vpop.f32.mrb[39].mxu0 }
 0x9dd   : > { %2648 = vmax.xlane.f32.xlu0 %v2647_v6 }
 0x9e2   : > { %2298 = vrot.lane.b32.xlu1 %v1991_v8, %s3997_s26 }
 0xa5e   : > { %v2640_v9 = vpop.xlane.xlu0 %2639  ;;  %v2643_v10 = vpop.xlane.xlu1 %2642 }
 0xa5f   : > { %v2650_v11 = vsub.f32 %v2634_v42, %v2640_v9  ;;  %v2651_v61 = vsub.f32 %v2635_v43, %v2643_v10 }
 0xa61   : > { %v2654_v13 = vmul.f32 1.442695, %v2650_v11  ;;  %v2656_v62 = vmul.f32 1.442695, %v2651_v61 }
 0xa62   : > { %v2299_v27 = vpop.permute.xlu1 %2298 }
 0xa63   : > { %3813 = vpow2.f32 %v2654_v13 }
 0xa64   : > { %3815 = vpow2.f32 %v2656_v62 }
 0xa66   : > { %v2646_v17 = vpop.xlane.xlu0 %2645 }
 0xa67   : > { %v2652_v19 = vsub.f32 %v2636_v50, %v2646_v17 }
 0xa69   : > { %v2658_v21 = vmul.f32 1.442695, %v2652_v19 }
 0xa6a   : > { %v2649_v18 = vpop.xlane.xlu0 %2648 }
 0xa6b   : > { %v2653_v20 = vsub.f32 %v2637_v3, %v2649_v18  ;;  %3817 = vpow2.f32 %v2658_v21 }
 0xa6d   : > { %v4557_v14 = vpop.eup %3813  ;;  %v2660_v22 = vmul.f32 1.442695, %v2653_v20 }
 0xa6e   : > { %v4559_v15 = vpop.eup %3815  ;;  %v2662_v16 = vsel %vm1171_vm2, %v4557_v14, 0.0 }
 0xa6f   : > { %2663 = vadd.xlane.f32.xlu1 %v2662_v16  ;;  %v2665_v49 = vsel %vm1171_vm2, %v4559_v15, 0.0  ;;  %3819 = vpow2.f32 %v2660_v22 }
 0xa70   : > { %2666 = vadd.xlane.f32.xlu0 %v2665_v49 }
 0xa75   : > { %v4567_v23 = vpop.eup %3817 }
 0xa76   : > { %v2668_v25 = vsel %vm1171_vm2, %v4567_v23, 0.0 }
 0xa79   : > { %v4569_v24 = vpop.eup %3819 }
 0xa7a   : > { %v2671_v12 = vsel %vm1171_vm2, %v4569_v24, 0.0 }
 0xa80   : > { %2304 = vrot.lane.b32.xlu1 %v1991_v8, %s3996_s24  ;;  %s537_s24 = sand.u32 1, %s4800_s23  }
 0xa81   : > { %s3402_s26 = sshll.u32 %s537_s24, 3  ;;  %s3253_s14 = scalar_lea.sflag [#allocation4], %s537_s24 }
 0xa82   : > { %s539_s21 = scalar_lea.vmem [#allocation8], %s3402_s26 }
 0xa83   : > { %s3266_s29 = sshll.u32 %s539_s21, 4  ;;  %s4710_s29 = int_to_ptr.vmem [resolvable:$true] %s3266_s29 }
 0xa84   : > { %s3917_s30 = scalar_lea.vmem %s4710_s29, 128 }
 0xa85   : > { %p3918_p12 = scmp.ne.s32.totalorder %s4710_s29, %s3917_s30 }
 0xa86   : > { %2301 = vrot.lane.b32.xlu0 %v1991_v8, %s3998_s18  ;;  %s4801_s18 = sld [smem:[#allocation18_spill]] }
 0xa8c   : > { %p4804_p7 = scmp.ne.s32.totalorder %s4801_s18, 0 }
 0xa8e   : > { %p3919_p8 = pnand %p3918_p12, %p4804_p7 }
 0xa90   : > { %p3920_p11 = pneg %p3919_p8 }
 0xaa4   : > { %2669 = vadd.xlane.f32.xlu1 %v2668_v25 }
 0xaa5   : > { %2672 = vadd.xlane.f32.xlu0 %v2671_v12 }
 0xafc   : > { %v2664_v28 = vpop.xlane.xlu1 %2663 }
 0xafd   : > { %v2667_v29 = vpop.xlane.xlu0 %2666  ;;  %3821 = vrcp.f32 %v2664_v28 }
 0xafe   : > { %3823 = vrcp.f32 %v2667_v29 }
 0xb00   : > { %v2305_v30 = vpop.permute.xlu1 %2304 }
 0xb01   : > { %v2323_v31 = vcombine.low %v2299_v27, %v2305_v30  ;;  %v2324_v32 = vcombine.high %v2299_v27, %v2305_v30  ;;  %v2302_v33 = vpop.permute.xlu0 %2301 }
 0xb02   : > { %v2307_v34 = vcombine.low %v1991_v8, %v2302_v33  ;;  %v2308_v35 = vcombine.high %v1991_v8, %v2302_v33 }
 0xb03   : > { %v2331_v36 = vrot.slane %v2323_v31, %v4273_v44  ;;  %v2338_v37 = vrot.slane %v2324_v32, %v4273_v44 }
 0xb04   : > { %v2315_v38 = vrot.slane %v2307_v34, %v4273_v44  ;;  %v2322_v39 = vrot.slane %v2308_v35, %v4273_v44 }
 0xb06   : > { %v2339_v40 = vcombine.low %v2315_v38, %v2331_v36  ;;  %v2340_v41 = vcombine.high %v2315_v38, %v2331_v36  ;;  %v2355_v26 = vcombine.low %v2322_v39, %v2338_v37  ;;  %v2356_v42 = vcombine.high %v2322_v39, %v2338_v37 }
 0xb07   : > { %v3822_v4 = vpop.eup %3821 }
 0xb08   : > { %v2347_v43 = vrot.slane %v2339_v40, %v4275_v51  ;;  %v2354_v45 = vrot.slane %v2340_v41, %v4275_v51  ;;  %v2363_v46 = vrot.slane %v2355_v26, %v4275_v51  ;;  %v2370_v47 = vrot.slane %v2356_v42, %v4275_v51  ;;  %v3824_v7 = vpop.eup %3823 }
 0xb09   : > { %v2678_v61 = vmul.f32 %v3822_v4, %v4557_v14  ;;  %v2679_v13 = vmul.f32 %v3824_v7, %v4559_v15  ;;  %v3025_v7 = vld [vmem:[#allocation5 + $0x70] sm:$0xff] }
 0xb0a   : > { %v2375_v48 = vcombine.low %v2347_v43, %v2354_v45  ;;  %v3443_v53 = vcombine.high %v2347_v43, %v2354_v45  ;;  %v2391_v54 = vcombine.low %v2363_v46, %v2370_v47  ;;  %v3444_v56 = vcombine.high %v2363_v46, %v2370_v47 }
 0xb0b   : > { %v2682_v20 = vpack.c.bf16 %v2678_v61, %v2678_v61  ;;  %v2683_v21 = vpack.c.bf16 %v2679_v13, %v2679_v13 }
 0xb0c   : > { %v2382_v57 = vrot.slane %v2375_v48, %v4273_v44  ;;  %v2390_v58 = vrot.slane %v3443_v53, %v4273_v44  ;;  %v2398_v59 = vrot.slane %v2391_v54, %v4273_v44  ;;  %v2406_v50 = vrot.slane %v3444_v56, %v4273_v44 }
 0xb0e   : > { %v2407_v52 = vcombine.low %v2382_v57, %v2390_v58  ;;  %v2408_v60 = vcombine.high %v2382_v57, %v2390_v58  ;;  %v2423_v63 = vcombine.low %v2398_v59, %v2406_v50  ;;  %v2424_v1 = vcombine.high %v2398_v59, %v2406_v50  ;;  %v3023_v59 = vld [vmem:[#allocation5 + $0x60] sm:$0xff]  ;;  %v3024_v50 = vld [vmem:[#allocation5 + $0x68] sm:$0xff] }
 0xb10   : > { %v2415_v2 = vrot.slane %v2407_v52, %v4275_v51  ;;  %v2422_v3 = vrot.slane %v2408_v60, %v4275_v51  ;;  %v2431_v5 = vrot.slane %v2423_v63, %v4275_v51  ;;  %v2438_v6 = vrot.slane %v2424_v1, %v4275_v51 }
 0xb12   : > { %v2439_v8 = vcombine.low %v2415_v2, %v2431_v5  ;;  %v2440_v9 = vcombine.high %v2415_v2, %v2431_v5  ;;  %v2441_v10 = vcombine.low %v2422_v3, %v2438_v6  ;;  %v2442_v11 = vcombine.high %v2422_v3, %v2438_v6 }
 0xb13   : > { %v3027_v2 = vpack.c.bf16 %v3024_v50, %v3023_v59  ;;  %v3165_v50 = vld [vmem:[%s4763_s12 + $0x18] sm:$0xff] }
 0xb14   : > { %v2443_v62 = vpack.c.bf16 %v2439_v8, %v2439_v8  ;;  %v2444_v16 = vpack.c.bf16 %v2440_v9, %v2440_v9  ;;  %v2445_v18 = vpack.c.bf16 %v2441_v10, %v2441_v10  ;;  %v2446_v19 = vpack.c.bf16 %v2442_v11, %v2442_v11  ;;  %v3026_v8 = vld [vmem:[#allocation5 + $0x78] sm:$0xff] }
 0xb15   : > { %v3028_v13 = vpack.c.bf16 %v3026_v8, %v3025_v7 }
 0xb16   : > { %v2690_v49 = vsel %vm1414_vm4, %v2443_v62, 0  ;;  %v2736_v17 = vsel %vm1414_vm4, %v2444_v16, 0  ;;  %v2782_v14 = vsel %vm1414_vm4, %v2445_v18, 0  ;;  %v2828_v15 = vsel %vm1414_vm4, %v2446_v19, 0 }
 0xb17   : > { %3662 = vmatpush3.bf16.msra.mxu1 %v2690_v49  ;;  %3668 = vmatpush3.bf16.msra.mxu0 %v2736_v17 }
 0xb18   : > { %3673 = vmatprep.subr.bf16.mxu1 %v3994_v0  ;;  %3679 = vmatprep.subr.bf16.mxu0 %v3994_v0 }
 0xb1a   : > { %3664 = vmatmul.mubr.msk.bf16.vlgmr.msra.gmra.mrb[36].mxu1 %vm1171_vm2, %v2682_v20  ;;  %3670 = vmatmul.mubr.msk.bf16.vlgmr.msra.gmra.mrb[40].mxu0 %vm1171_vm2, %v2683_v21 }
 0xb1b   : > { %3674 = vmatpush3.bf16.msra.mxu1 %v2782_v14  ;;  %3680 = vmatpush3.bf16.msra.mxu0 %v2828_v15 }
 0xb1c   : > { %3675 = vmatprep.mubr.msk.bf16.mxu1 %vm3995_vm0, %v3994_v0  ;;  %3681 = vmatprep.mubr.msk.bf16.mxu0 %vm3995_vm0, %v3994_v0 }
 0xb1d   : > { %3685 = vmatprep.subr.bf16.mxu1 %v3994_v0  ;;  %3693 = vmatprep.subr.bf16.mxu0 %v3994_v0 }
 0xb31   : > { %v2670_v22 = vpop.xlane.xlu1 %2669 }
 0xb32   : > { %3825 = vrcp.f32 %v2670_v22  ;;  %v2673_v25 = vpop.xlane.xlu0 %2672 }
 0xb33   : > { %3827 = vrcp.f32 %v2673_v25 }
 0xb3c   : > { %v3826_v12 = vpop.eup %3825 }
 0xb3d   : > { %v3828_v27 = vpop.eup %3827  ;;  %v2680_v28 = vmul.f32 %v3826_v12, %v4567_v23 }
 0xb3e   : > { %v2681_v29 = vmul.f32 %v3828_v27, %v4569_v24 }
 0xb3f   : > { %v2684_v30 = vpack.c.bf16 %v2680_v28, %v2680_v28 }
 0xb40   : > { %v2685_v31 = vpack.c.bf16 %v2681_v29, %v2681_v29 }
 0xb41   : > { %3676 = vmatmul.mubr.msk.bf16.vlgmr.msra.gmra.mrb[40].mxu1 %vm1171_vm2, %v2684_v30 }
 0xb42   : > { %3682 = vmatmul.mubr.msk.bf16.vlgmr.msra.gmra.mrb[44].mxu0 %vm1171_vm2, %v2685_v31  ;;  %3689 = vmatprep.mubr.msk.bf16.mxu1 %vm3995_vm0, %v3994_v0 }
 0xb43   : > { %3697 = vmatprep.mubr.msk.bf16.mxu0 %vm3995_vm0, %v3994_v0  ;;  %3686 = vmatpush3.bf16.msra.mxu1 %v3027_v2 }
 0xb44   : > { %3687 = vmatprep.subr.bf16.mxu1 %v3994_v0 }
 0xb47   : > { %3688 = vmatpush3.bf16.msra.mxu1 %v3028_v13  ;;  %v3169_v13 = vld [vmem:[%s4763_s12 + $0x38] sm:$0xff] }
 0xb48   : > { %3701 = vmatprep.subr.bf16.mxu1 %v3994_v0 }
 0xbed   : > { %v2726_v32 = vpop.f32.mrb[36].mxu1  ;;  %v2772_v33 = vpop.f32.mrb[40].mxu0 }
 0xbee   : > { %v3665_v34 = vpop.f32.mrb[37].mxu1  ;;  %v3671_v35 = vpop.f32.mrb[41].mxu0 }
 0xbef   : > { %v2729_v36 = vpop.f32.mrb[38].mxu1  ;;  %v2775_v23 = vpop.f32.mrb[42].mxu0  ;;  %v3455_v35 = vld [vmem:[%s4758_s7 + $0x3] ss:$0 sm:$0xff] }
 0xbf0   : > { %v3666_v37 = vpop.f32.mrb[39].mxu1  ;;  %v3672_v24 = vpop.f32.mrb[43].mxu0 }
 0xc14   : > { %v2818_v38 = vpop.f32.mrb[40].mxu1 }
 0xc15   : > { %v2870_v39 = vcombine.low %v2726_v32, %v2818_v38  ;;  %v2871_v40 = vcombine.high %v2726_v32, %v2818_v38  ;;  %v2864_v41 = vpop.f32.mrb[44].mxu0  ;;  %v3677_v26 = vpop.f32.mrb[41].mxu1 }
 0xc16   : > { %v2886_v42 = vcombine.low %v2772_v33, %v2864_v41  ;;  %v2887_v43 = vcombine.high %v2772_v33, %v2864_v41  ;;  %v3683_v45 = vpop.f32.mrb[45].mxu0  ;;  %v2821_v46 = vpop.f32.mrb[42].mxu1 }
 0xc17   : > { %v2878_v47 = vrot.slane %v2870_v39, %v4273_v44  ;;  %v2885_v48 = vrot.slane %v2871_v40, %v4273_v44  ;;  %v2867_v53 = vpop.f32.mrb[46].mxu0  ;;  %v3678_v54 = vpop.f32.mrb[43].mxu1  ;;  %v3104_v46 = vld [vmem:[%s4761_s10] sm:$0xff] }
 0xc18   : > { %v2894_v56 = vrot.slane %v2886_v42, %v4273_v44  ;;  %v2901_v57 = vrot.slane %v2887_v43, %v4273_v44  ;;  %v3684_v58 = vpop.f32.mrb[47].mxu0  ;;  %v3107_v53 = vld [vmem:[%s4761_s10 + $0x18] sm:$0xff] }
 0xc19   : > { %v3164_v58 = vld [vmem:[%s4763_s12 + $0x10] sm:$0xff] }
 0xc1a   : > { %v2902_v52 = vcombine.low %v2878_v47, %v2894_v56  ;;  %v2903_v60 = vcombine.high %v2878_v47, %v2894_v56  ;;  %v2918_v63 = vcombine.low %v2885_v48, %v2901_v57  ;;  %v2919_v1 = vcombine.high %v2885_v48, %v2901_v57  ;;  %v3105_v47 = vld [vmem:[%s4761_s10 + $0x8] sm:$0xff]  ;;  %v3162_v56 = vld [vmem:[%s4763_s12] sm:$0xff] }
 0xc1b   : > { %v3108_v48 = vpack.c.bf16 %v3105_v47, %v3104_v46  ;;  %v3163_v57 = vld [vmem:[%s4763_s12 + $0x8] sm:$0xff] }
 0xc1c   : > { %v2910_v3 = vrot.slane %v2902_v52, %v4275_v51  ;;  %v2917_v4 = vrot.slane %v2903_v60, %v4275_v51  ;;  %v2926_v5 = vrot.slane %v2918_v63, %v4275_v51  ;;  %v2933_v6 = vrot.slane %v2919_v1, %v4275_v51 }
 0xc1d   : > { %3694 = vmatpush3.bf16.msra.mxu0 %v3108_v48  ;;  %v3170_v59 = vpack.c.bf16 %v3163_v57, %v3162_v56  ;;  %v3171_v52 = vpack.c.bf16 %v3165_v50, %v3164_v58 }
 0xc1e   : > { %v2938_v9 = vcombine.low %v2910_v3, %v2917_v4  ;;  %v3453_v10 = vcombine.high %v2910_v3, %v2917_v4  ;;  %v2954_v11 = vcombine.low %v2926_v5, %v2933_v6  ;;  %v3454_v61 = vcombine.high %v2926_v5, %v2933_v6  ;;  %3695 = vmatprep.subr.bf16.mxu0 %v3994_v0  ;;  %v3457_v3 = vld [vmem:[%s4759_s8 + $0x1] ss:$0 sm:$0xff] }
 0xc1f   : > { %v3458_v5 = vld [vmem:[#allocation7 + $0x1] ss:$0 sm:$0xff] }
 0xc20   : > { %v2945_v62 = vrot.slane %v2938_v9, %v4273_v44  ;;  %v2953_v16 = vrot.slane %v3453_v10, %v4273_v44  ;;  %v2961_v49 = vrot.slane %v2954_v11, %v4273_v44  ;;  %v2969_v17 = vrot.slane %v3454_v61, %v4273_v44  ;;  %v3166_v9 = vld [vmem:[%s4763_s12 + $0x20] sm:$0xff]  ;;  %v3167_v10 = vld [vmem:[%s4763_s12 + $0x28] sm:$0xff]  ;;  %v3168_v61 = vld [vmem:[%s4763_s12 + $0x30] sm:$0xff] }
 0xc21   : > { %v3172_v11 = vpack.c.bf16 %v3167_v10, %v3166_v9 }
 0xc22   : > { %v2971_v18 = vcombine.high %v2945_v62, %v2953_v16  ;;  %v2987_v19 = vcombine.high %v2961_v49, %v2969_v17  ;;  %v2970_v20 = vcombine.low %v2945_v62, %v2953_v16  ;;  %v2986_v21 = vcombine.low %v2961_v49, %v2969_v17  ;;  %v3459_v16 = vld [vmem:[%s4762_s11] ss:$0 sm:$0xff] }
 0xc23   : > { %v3173_v62 = vpack.c.bf16 %v3169_v13, %v3168_v61 }
 0xc24   : > { %v2985_v14 = vrot.slane %v2971_v18, %v4275_v51  ;;  %v3001_v15 = vrot.slane %v2987_v19, %v4275_v51  ;;  %v2978_v22 = vrot.slane %v2970_v20, %v4275_v51  ;;  %v2994_v25 = vrot.slane %v2986_v21, %v4275_v51 }
 0xc26   : > { %v3004_v12 = vcombine.low %v2985_v14, %v3001_v15  ;;  %v3003_v27 = vcombine.high %v2978_v22, %v2994_v25  ;;  %v3005_v28 = vcombine.high %v2985_v14, %v3001_v15  ;;  %v3002_v29 = vcombine.low %v2978_v22, %v2994_v25  ;;  %v3461_v14 = vld [vmem:[%s4799_s22] ss:$0 sm:$0xff] }
 0xc28   : > { %3011 = vrot.lane.b32.xlu1 %v3004_v12, %s4001_s16  ;;  %3007 = vrot.lane.b32.xlu0 %v3003_v27, %s4002_s25 }
 0xc2c   : > { %3015 = vrot.lane.b32.xlu1 %v3005_v28, %s4003_s28  ;;  %s3466_s28 = sshll.u32 %s4101_s17, 7  ;;  %s4004_s17 = smov [#allocation8]  }
 0xc2d   : > { %s4708_s13 = scalar_lea.hbm %s4802_s15, %s3466_s28  ;;  %s3921_s22 = sshll.u32 %s4004_s17, 4  ;;  %s3922_s22 = int_to_ptr.vmem [resolvable:$false] %s3921_s22 }
 0xc2e   : > { %s3923_s23 = scalar_lea.vmem %s3922_s22, 256  ;;  %p3924_p13 = scmp.lt.s32.totalorder %s4710_s29, %s3922_s22 }
 0xc2f   : > { %p3925_p1 = scmp.lt.s32.totalorder %s3923_s23, %s3917_s30 }
 0xc31   : > { %p3926_p6 = por %p3925_p1, %p3924_p13 }
 0xc33   : > { %p3927_p9 = pnand %p3926_p6, %p3920_p11 }
 0xc9a   : > { %v3012_v44 = vpop.permute.xlu1 %3011  ;;  %v3008_v30 = vpop.permute.xlu0 %3007 }
 0xc9b   : > { %v3018_v31 = vsel %vm1171_vm2, %v3002_v29, %v3008_v30 }
 0xc9c   : > { %v3019_v33 = vsel %vm1745_vm5, %v3018_v31, %v3012_v44 }
 0xc9e   : > { %v3016_v32 = vpop.permute.xlu1 %3015 }
 0xc9f   : > { %v3020_v34 = vsel %vm1747_vm6, %v3019_v33, %v3016_v32 }
 0xca0   : > { %v3021_v51 = vpack.c.bf16 %v3020_v34, %v3020_v34 }
 0xca2   : > { %3690 = vmatmul.mubr.msk.bf16.vlgmr.msra.gmra.mrb[44].mxu1 %vm572_vm1, %v3021_v51 }
 0xca3   : > { %3709 = vmatprep.mubr.msk.bf16.mxu1 %vm3995_vm0, %v3994_v0  ;;  %3702 = vmatpush3.bf16.msra.mxu1 %v3170_v59 }
 0xca4   : > { %3703 = vmatprep.subr.bf16.mxu1 %v3994_v0 }
 0xca7   : > { %3704 = vmatpush3.bf16.msra.mxu1 %v3171_v52 }
 0xca8   : > { %3705 = vmatprep.subr.bf16.mxu1 %v3994_v0 }
 0xcab   : > { %3706 = vmatpush3.bf16.msra.mxu1 %v3172_v11 }
 0xcac   : > { %3707 = vmatprep.subr.bf16.mxu1 %v3994_v0 }
 0xcaf   : > { %3708 = vmatpush3.bf16.msra.mxu1 %v3173_v62 }
 0xd75   : > { %v3071_v36 = vpop.f32.mrb[44].mxu1 }
 0xd76   : > { %v3072_v23 = vadd.f32 %v3455_v35, %v3071_v36  ;;  %v3691_v37 = vpop.f32.mrb[45].mxu1 }
 0xd77   : > { %v3074_v24 = vpop.f32.mrb[46].mxu1 }
 0xd78   : > { %v3692_v38 = vpop.f32.mrb[47].mxu1  ;;  %v3077_v39 = vadd.f32 %v3072_v23, %v4459_v55  ;;  %v3106_v55 = vld [vmem:[%s4761_s10 + $0x10] sm:$0xff]  ;;  %v3463_v23 = vld [vmem:[%s4759_s8 + $0x2] ss:$0 sm:$0xff] }
 0xd79   : > { %v3109_v54 = vpack.c.bf16 %v3107_v53, %v3106_v55  ;;  %v3464_v24 = vld [vmem:[#allocation7 + $0x2] ss:$0 sm:$0xff] }
 0xd7a   : > { %v3080_v40 = vsel %vm572_vm1, %v3077_v39, 0.0 }
 0xd7b   : > { %3081 = vadd.xlane.f32.xlu0 %v3080_v40  ;;  %3696 = vmatpush3.bf16.msra.mxu0 %v3109_v54 }
 0xe08   : > { %v3082_v41 = vpop.xlane.xlu0 %3081 }
 0xe09   : > { %v3083_v26 = vmul.f32 0.03125, %v3082_v41 }
 0xe0b   : > { %v3084_v42 = vsub.f32 %v3077_v39, %v3083_v26 }
 0xe0d   : > { %v3085_v43 = vmul.f32 %v3084_v42, %v3084_v42 }
 0xe0f   : > { %v3086_v45 = vsel %vm572_vm1, %v3085_v43, 0.0 }
 0xe10   : > { %3087 = vadd.xlane.f32.xlu1 %v3086_v45 }
 0xe9d   : > { %v3088_v60 = vpop.xlane.xlu1 %3087 }
 0xe9e   : > { %v3089_v63 = vmul.f32 0.03125, %v3088_v60 }
 0xea0   : > { %v3090_v1 = vadd.f32 1e-05, %v3089_v63 }
 0xea2   : > { %3829 = vrsqrt.f32 %v3090_v1 }
 0xeac   : > { %v3830_v2 = vpop.eup %3829 }
 0xead   : > { %v3092_v4 = vmul.f32 %v3830_v2, %v3084_v42 }
 0xeaf   : > { %v3097_v6 = vmul.f32 %v3457_v3, %v3092_v4 }
 0xeb1   : > { %v3102_v7 = vadd.f32 %v3458_v5, %v3097_v6 }
 0xeb3   : > { %v3103_v8 = vpack.c.bf16 %v3102_v7, %v3102_v7 }
 0xeb5   : > { %3698 = vmatmul.mubr.msk.bf16.vlgmr.msra.gmra.mrb[48].mxu0 %vm572_vm1, %v3103_v8 }
 0xf88   : > { %v3154_v49 = vpop.f32.mrb[48].mxu0 }
 0xf89   : > { %v3155_v17 = vadd.f32 %v3459_v16, %v3154_v49  ;;  %v3699_v18 = vpop.f32.mrb[49].mxu0 }
 0xf8a   : > { %v3157_v19 = vpop.f32.mrb[50].mxu0 }
 0xf8b   : > { %v3160_v20 = vmax.f32 %v3155_v17, 0.0  ;;  %v3700_v0 = vpop.f32.mrb[51].mxu0 }
 0xf8d   : > { %v3161_v21 = vpack.c.bf16 %v3160_v20, %v3160_v20 }
 0xf8f   : > { %3710 = vmatmul.mubr.msk.bf16.vlgmr.msra.gmra.mrb[48].mxu1 %vm3181_vm8, %v3161_v21 }
0x1062   : > { %v3219_v15 = vpop.f32.mrb[48].mxu1 }
0x1063   : > { %v3220_v22 = vadd.f32 %v3461_v14, %v3219_v15  ;;  %v3711_v25 = vpop.f32.mrb[49].mxu1 }
0x1064   : > { %v3222_v12 = vpop.f32.mrb[50].mxu1 }
0x1065   : > { %v3712_v27 = vpop.f32.mrb[51].mxu1  ;;  %v3225_v28 = vadd.f32 %v3220_v22, %v3102_v7 }
0x1067   : > { %v3228_v29 = vsel %vm572_vm1, %v3225_v28, 0.0 }
0x1068   : > { %3229 = vadd.xlane.f32.xlu0 %v3228_v29 }
0x10f5   : > { %v3230_v44 = vpop.xlane.xlu0 %3229 }
0x10f6   : > { %v3231_v30 = vmul.f32 0.03125, %v3230_v44 }
0x10f8   : > { %v3232_v31 = vsub.f32 %v3225_v28, %v3231_v30 }
0x10fa   : > { %v3233_v32 = vmul.f32 %v3232_v31, %v3232_v31 }
0x10fc   : > { %v3234_v33 = vsel %vm572_vm1, %v3233_v32, 0.0 }
0x10fd   : > { %3235 = vadd.xlane.f32.xlu0 %v3234_v33 }
0x118a   : > { %v3236_v34 = vpop.xlane.xlu0 %3235 }
0x118b   : > { %v3237_v51 = vmul.f32 0.03125, %v3236_v34 }
0x118d   : > { %v3238_v35 = vadd.f32 1e-05, %v3237_v51 }
0x118f   : > { %3831 = vrsqrt.f32 %v3238_v35 }
0x1199   : > { %v3832_v36 = vpop.eup %3831 }
0x119a   : > { %v3240_v37 = vmul.f32 %v3832_v36, %v3232_v31 }
0x119c   : > { %v3245_v38 = vmul.f32 %v3463_v23, %v3240_v37 }
0x119e   : > { %v3250_v39 = vadd.f32 %v3464_v24, %v3245_v38 }
0x11a0   : > { %3251 = vst.msk [vmem:[%s539_s21] sm:$0xff] %vm572_vm1, %v3250_v39 }
0x11a1   : > { %3930 = shalt.err (!%p3927_p9)
}
0x11a2   : > { %s3931_s24 = scalar_lea.hbm %s4708_s13, 128  ;;  %s3935_s25 = scalar_lea.hbm %s4803_s19, 256 }
0x11a3   : > { %p3932_p2 = scmp.ne.s32.totalorder %s4708_s13, %s3931_s24  ;;  %p3936_p4 = scmp.lt.u32.totalorder %s4708_s13, %s4803_s19 }
0x11a4   : > { %p3937_p5 = scmp.lt.u32.totalorder %s3935_s25, %s3931_s24  ;;  %p3939_p12 = scmp.lt.u32.totalorder %s3931_s24, %s4708_s13 }
0x11a5   : > { %p3933_p3 = pnand %p3932_p2, %p4804_p7 }
0x11a6   : > { %p3938_p10 = por %p3937_p5, %p3936_p4 }
0x11a7   : > { %p3934_p0 = pneg %p3933_p3 }
0x11a8   : > { %p3940_p8 = por %p3939_p12, %p3938_p10 }
0x11aa   : > { %p3941_p11 = pnand %p3940_p8, %p3934_p0 }
0x11ac   : > { %3944 = shalt.err (!%p3941_p11)
}
0x11ad   : > { %3725 = dma.vmem_to_hbm [thread:$0]  (%p4804_p7), %s4710_s29, 128, %s4708_s13, %s3253_s14  }
0x11ae PF: > { %s4805_s27 = sld [smem:[#allocation15_spill]]  ;;  %s4806_s20 = sld [smem:[#allocation12_spill]] }
0x11af   : > { %s4807_s15 = sld [smem:[#allocation19_spill]] }
0x11b4   : > { %p3747_p13 = scmp.ge.s32.totalorder %s4805_s27, 2  ;;  %s3278_s30 = sand.u32 1, %s4806_s20  }
0x11b5   : > { %p4808_p1 = scmp.ne.s32.totalorder %s4807_s15, 0  ;;  %s3279_s17 = scalar_lea.sflag [#allocation4], %s3278_s30 }
0x11b7   : > { %p3738_p6 = pnand %p3747_p13, %p4808_p1 }
0x11b9   : > { %3970 = dma.done.wait (!%p3738_p6), %s3279_s17, 128  }
0x11ba   : > { %3972 = vsyncadd (!%p3738_p6), %s3279_s17, 4294967168  ;;  %s4809_s16 = sld [smem:[#allocation16_spill]]  ;;  %s4810_s29 = sld [smem:[#allocation13_spill]] }
0x11bb   : > { %s4811_s30 = sld [smem:[#allocation14_spill]]  ;;  %s4812_s15 = sld [smem:[#allocation17_spill]] }
0x11c0   : > { %p26_p9 = scmp.ge.s32.totalorder %s4809_s16, 4  }
0x11c2   :  { %28 = sbr.rel (!%p26_p9) target bundleno = 8 (0x8), region = 139 }
0x11c9   :  { %3284 = vsyncpa [#allocation3], 1 }
0x11ca   :  { %3286 = vsyncpa [#allocation3 + $0x1], 1 }
0x11cb   :  { %3287 = vsyncpa [#allocation6], 1 }
0x11cc   :  { %3288 = vsyncpa [#allocation4], 1 }
0x11cd   :  { %3290 = vsyncpa [#allocation4 + $0x1], 1 }

</bundles_post_ra>
